<compile_context>
chip_gen: v7x
topology: tpu7x:2x2x1
jax: 0.10.0
libtpu: 0.0.40
codegen_flags: <defaults>
</compile_context>

<pallas_src>
import numpy as np

import jax
import jax.numpy as jnp
from jax.experimental import pallas as pl
from jax.experimental.pallas import tpu as pltpu

EPS = 1e-5


def _round_up(x, m):
    return (x + m - 1) // m * m


def _vmem_limit_bytes():
    # Generation-aware VMEM budget: ~3/4 of physical, capped at 96 MiB
    # (v5e/v6e: 128 MiB physical -> 96 MiB; v7x: 64 MiB -> 48 MiB).
    try:
        cap = int(pltpu.get_tpu_info().vmem_capacity_bytes)
    except Exception:
        return 32 * 1024 * 1024          # safe flat default if the query fails
    return int(min(96 * 1024 * 1024, cap // 4 * 3))


def _compiler_params():
    return pltpu.CompilerParams(
        dimension_semantics=("parallel",),          # all grids here are rank 1
        vmem_limit_bytes=_vmem_limit_bytes())


def _tap_mask(Ho, Wo):
    """(Ho*Wo, 9) f32 tap-validity mask for a 3x3 / pad-1 conv on the flattened
    (h, w) row-major output grid; column t = (dy+1)*3 + (dx+1).  Built with
    numpy at trace time -> a compile-time constant, no per-step iota/mod."""
    h = np.arange(Ho * Wo) // Wo
    w = np.arange(Ho * Wo) % Wo
    cols = []
    for dy in (-1, 0, 1):
        for dx in (-1, 0, 1):
            cols.append((h + dy >= 0) & (h + dy < Ho) & (w + dx >= 0) & (w + dx < Wo))
    return jnp.asarray(np.stack(cols, axis=1), dtype=jnp.float32)


# --------------------------------------------------------------------------- #
# In-kernel 3x3 / stride-1 / pad-1 convolution on a flattened image.
# --------------------------------------------------------------------------- #
def _conv3x3_from_halo(hal_ref, w_ref, mask_ref, M, Wo, top):
    """hal_ref: (top + M + Wo + 1, C) f32 scratch.  Rows [top, top+M) hold the
    image's M = Ho*Wo pixels in (h, w) row-major order; rows outside that range
    are never written and every read that lands on them (or wraps to a wrong
    pixel) is select-masked away via the precomputed tap-validity mask, so no
    halo zero-fill is needed (megacore-safe, no redundant vst work).
    w_ref: (9*C, P) bf16, tap-major HWIO.  mask_ref: (M, 9) f32.
    Returns the (M, P) f32 conv output from one [M,9C]x[9C,P] MXU contraction
    with bf16 operands and f32 accumulation."""
    maskv = mask_ref[...]                              # (M, 9) f32, loaded once
    taps = []
    t = 0
    for dy in (-1, 0, 1):
        for dx in (-1, 0, 1):
            win = hal_ref[pl.ds(top + dy * Wo + dx, M), :]
            if not (dy == 0 and dx == 0):              # center tap always valid
                win = jnp.where(maskv[:, t:t + 1] != 0.0, win, 0.0)
            taps.append(win)
            t += 1
    # TODO(synk): for Cin not a multiple of 128 the lane concat may repack; a
    # per-dy 3-dot accumulating decomposition (cheap on v7x's MRB) is an option.
    patches = jnp.concatenate(taps, axis=-1).astype(jnp.bfloat16)    # (M, 9C)
    return jnp.dot(patches, w_ref[...], preferred_element_type=jnp.float32)


def _partial_stats(y):
    # fused per-channel sum / sum-of-squares in a single traversal (train BN),
    # computed on the f32 accumulator *before* the bf16 downcast to HBM.
    return jnp.concatenate(
        [jnp.sum(y, axis=0, keepdims=True),
         jnp.sum(y * y, axis=0, keepdims=True)], axis=0)


# --------------------------------------------------------------------------- #
# Pass 1: conv1 (+ fused 1x1 projection via extra weight columns) + BN partials.
# --------------------------------------------------------------------------- #
def _make_pass1_halo_kernel(M, Wo, top):
    def kernel(x_ref, w_ref, mask_ref, y_ref, st_ref, halo_ref):
        halo_ref[pl.ds(top, M), :] = x_ref[...].astype(jnp.float32)
        y = _conv3x3_from_halo(halo_ref, w_ref, mask_ref, M, Wo, top)  # (M, Pc) f32
        st_ref[...] = _partial_stats(y)
        y_ref[...] = y.astype(jnp.bfloat16)
    return kernel


def _pass1_im2col_kernel(x_ref, w_ref, y_ref, st_ref):
    # strided conv1: patches built in the wrapper (bf16), one MXU dot here.
    y = jnp.dot(x_ref[...], w_ref[...], preferred_element_type=jnp.float32)
    st_ref[...] = _partial_stats(y)
    y_ref[...] = y.astype(jnp.bfloat16)


# --------------------------------------------------------------------------- #
# Pass 2: BN1 (global stats) + ReLU + conv2 (halo taps) + BN2 partial stats.
# --------------------------------------------------------------------------- #
def _make_pass2_kernel(M, Wo, top, P, Pc):
    def kernel(y1_ref, sc1_ref, sh1_ref, w2_ref, mask_ref, y2_ref, st2_ref, halo_ref):
        y1c = y1_ref[...].astype(jnp.float32)          # (M, Pc) bf16 -> f32
        y1 = y1c[:, :P] if Pc != P else y1c            # conv1 half of the fused block
        a1 = jnp.maximum(y1 * sc1_ref[...] + sh1_ref[...], 0.0)       # BN1+ReLU, f32
        halo_ref[pl.ds(top, M), :] = a1
        y2 = _conv3x3_from_halo(halo_ref, w2_ref, mask_ref, M, Wo, top)
        st2_ref[...] = _partial_stats(y2)
        y2_ref[...] = y2.astype(jnp.bfloat16)
    return kernel


# --------------------------------------------------------------------------- #
# Pass 3: BN2 + shortcut (projection BN or identity) + residual add.
# --------------------------------------------------------------------------- #
def _make_pass3_proj_kernel(P):
    def kernel(y2_ref, y1c_ref, sc2_ref, sh2_ref, scs_ref, shs_ref, out_ref):
        y2 = y2_ref[...].astype(jnp.float32)
        ysc = y1c_ref[...].astype(jnp.float32)[:, P:]  # projection half of fused block
        out_ref[...] = (y2 * sc2_ref[...] + sh2_ref[...]
                        + ysc * scs_ref[...] + shs_ref[...]).astype(out_ref.dtype)
    return kernel


def _pass3_id_kernel(y2_ref, xid_ref, sc2_ref, sh2_ref, out_ref):
    out_ref[...] = (y2_ref[...].astype(jnp.float32) * sc2_ref[...] + sh2_ref[...]
                    + xid_ref[...].astype(jnp.float32)).astype(out_ref.dtype)


# --------------------------------------------------------------------------- #
# Glue: combine per-image (sum, sumsq) partials into fused BN scale/shift (f32).
# --------------------------------------------------------------------------- #
def _bn_scale_shift(stats, gamma, beta, count):
    # stats: (N, 2, C) f32.  NOTE: sum/sumsq combination can cancel if the
    # activations are far from zero-mean; the max(...,0) guard keeps it finite.
    s = jnp.sum(stats[:, 0, :], axis=0)
    ss = jnp.sum(stats[:, 1, :], axis=0)
    mean = s / count
    var = jnp.maximum(ss / count - mean * mean, 0.0)
    scale = gamma.astype(jnp.float32) * jax.lax.rsqrt(var + EPS)
    shift = beta.astype(jnp.float32) - mean * scale
    return scale.reshape(1, -1), shift.reshape(1, -1)


def _pick_row_tile(total, max_rows=4096):
    """Largest divisor of `total` that keeps the (rows, C) block sublane-aligned
    (multiple of 8) and yields >= 2 grid steps (both v7x TensorCores busy)."""
    for cand in range(min(total, max_rows), 7, -1):
        if total % cand == 0 and cand % 8 == 0 and total // cand >= 2:
            return cand
    return total                                        # single full block


# --------------------------------------------------------------------------- #
# NHWC core (no layout transposes); NCHW wrapper below for PyTorch parity.
# --------------------------------------------------------------------------- #
def basic_block_forward_nhwc(x_nhwc, params, stride):
    N, H, W, Cin = x_nhwc.shape
    P = params["w1"].shape[0]
    Ho = (H + 2 - 3) // stride + 1
    Wo = (W + 2 - 3) // stride + 1
    M = Ho * Wo                          # rows per image (flattened h*Wo + w)
    count = N * M
    has_projection = "wsc" in params
    if not has_projection:
        assert stride == 1 and Cin == P
    use_halo = (stride == 1)             # conv1 fully in-kernel when stride == 1
    Pc = 2 * P if has_projection else P  # fused conv1(+projection) output width
    top = _round_up(Wo + 1, 8)           # top halo rows (aligned store offset)
    hal_rows = top + M + Wo + 1
    cparams = _compiler_params()

    tap_mask = _tap_mask(Ho, Wo)                                      # (M, 9) f32

    # PyTorch OIHW weights -> tap-major HWIO matrices, bf16 for the MXU.
    w1m = jnp.transpose(params["w1"], (2, 3, 1, 0)).reshape(9 * Cin, P).astype(jnp.bfloat16)
    if has_projection:
        # Fuse the 1x1 projection: extra output columns whose weight rows are
        # zero except at the center tap (which reads exactly x[h*stride, w*stride]).
        wscm = jnp.transpose(params["wsc"], (2, 3, 1, 0)).reshape(Cin, P).astype(jnp.bfloat16)
        proj_cols = jnp.zeros((9 * Cin, P), jnp.bfloat16).at[4 * Cin:5 * Cin, :].set(wscm)
        w1m = jnp.concatenate([w1m, proj_cols], axis=1)               # (9*Cin, 2P)
    w2m = jnp.transpose(params["w2"], (2, 3, 1, 0)).reshape(9 * P, P).astype(jnp.bfloat16)

    img_spec = lambda r, c: pl.BlockSpec((None, r, c), lambda n: (n, 0, 0))
    full_spec = lambda r, c: pl.BlockSpec((r, c), lambda n: (0, 0))

    x_flat = x_nhwc.reshape(N, H * W, Cin).astype(jnp.bfloat16)       # bf16 in HBM

    # ---------------- pass 1: conv1 (+ fused projection) + BN partials --------
    if use_halo:
        p1_in = [x_flat, w1m, tap_mask]
        p1_in_specs = [img_spec(M, Cin), full_spec(9 * Cin, Pc), full_spec(M, 9)]
        p1_kernel = _make_pass1_halo_kernel(M, Wo, top)
        p1_scratch = [pltpu.VMEM((hal_rows, Cin), jnp.float32)]
        bytes_in1 = N * M * Cin * 2
    else:
        # Strided conv1: wrapper-side im2col (expansion 9/stride^2), stored bf16.
        xb = x_nhwc.astype(jnp.bfloat16)
        xp = jnp.pad(xb, ((0, 0), (1, 1), (1, 1), (0, 0)))
        taps = [xp[:, kh:kh + stride * (Ho - 1) + 1:stride,
                      kw:kw + stride * (Wo - 1) + 1:stride, :]
                for kh in range(3) for kw in range(3)]
        x1 = jnp.stack(taps, axis=3).reshape(N, M, 9 * Cin)
        p1_in = [x1, w1m]
        p1_in_specs = [img_spec(M, 9 * Cin), full_spec(9 * Cin, Pc)]
        p1_kernel = _pass1_im2col_kernel
        p1_scratch = []
        bytes_in1 = N * M * 9 * Cin * 2
    flops1 = 2 * N * M * 9 * Cin * Pc
    bytes1 = bytes_in1 + 9 * Cin * Pc * 2 + N * M * Pc * 2 + N * 2 * Pc * 4

    y1c, st1 = pl.pallas_call(
        p1_kernel,
        grid=(N,),
        in_specs=p1_in_specs,
        out_specs=(img_spec(M, Pc), img_spec(2, Pc)),
        out_shape=(jax.ShapeDtypeStruct((N, M, Pc), jnp.bfloat16),
                   jax.ShapeDtypeStruct((N, 2, Pc), jnp.float32)),
        scratch_shapes=p1_scratch,
        compiler_params=cparams,
        cost_estimate=pl.CostEstimate(flops=flops1, transcendentals=0,
                                      bytes_accessed=bytes1),
    )(*p1_in)

    sc1, sh1 = _bn_scale_shift(st1[:, :, :P], params["g1"], params["b1"], count)

    # ---------------- pass 2: BN1 + ReLU + conv2 + BN2 partials ---------------
    flops2 = 2 * N * M * 9 * P * P
    bytes2 = N * M * Pc * 2 + N * M * P * 2 + 9 * P * P * 2 + N * 2 * P * 4
    y2, st2 = pl.pallas_call(
        _make_pass2_kernel(M, Wo, top, P, Pc),
        grid=(N,),
        in_specs=[img_spec(M, Pc), full_spec(1, P), full_spec(1, P),
                  full_spec(9 * P, P), full_spec(M, 9)],
        out_specs=(img_spec(M, P), img_spec(2, P)),
        out_shape=(jax.ShapeDtypeStruct((N, M, P), jnp.bfloat16),
                   jax.ShapeDtypeStruct((N, 2, P), jnp.float32)),
        scratch_shapes=[pltpu.VMEM((hal_rows, P), jnp.float32)],
        compiler_params=cparams,
        cost_estimate=pl.CostEstimate(flops=flops2, transcendentals=0,
                                      bytes_accessed=bytes2),
    )(y1c, sc1, sh1, w2m, tap_mask)

    sc2, sh2 = _bn_scale_shift(st2, params["g2"], params["b2"], count)

    # ---------------- pass 3: BN2 + shortcut + residual add (row-tiled) -------
    total = N * M
    tr = _pick_row_tile(total)
    row_spec = lambda c: pl.BlockSpec((tr, c), lambda i: (i, 0))
    vec_spec = pl.BlockSpec((1, P), lambda i: (0, 0))
    y2f = y2.reshape(total, P)
    if has_projection:
        scs, shs = _bn_scale_shift(st1[:, :, P:], params["gsc"], params["bsc"], count)
        out_flat = pl.pallas_call(
            _make_pass3_proj_kernel(P),
            grid=(total // tr,),
            in_specs=[row_spec(P), row_spec(Pc),
                      vec_spec, vec_spec, vec_spec, vec_spec],
            out_specs=row_spec(P),
            out_shape=jax.ShapeDtypeStruct((total, P), jnp.float32),
            compiler_params=cparams,
        )(y2f, y1c.reshape(total, Pc), sc2, sh2, scs, shs)
    else:
        out_flat = pl.pallas_call(
            _pass3_id_kernel,
            grid=(total // tr,),
            in_specs=[row_spec(P), row_spec(P), vec_spec, vec_spec],
            out_specs=row_spec(P),
            out_shape=jax.ShapeDtypeStruct((total, P), jnp.float32),
            compiler_params=cparams,
        )(y2f, x_flat.reshape(total, P), sc2, sh2)

    return out_flat.reshape(N, Ho, Wo, P)


def basic_block_forward(x_nchw, params, stride):
    # NCHW transposes only for PyTorch API parity; a fused ResNet would stay NHWC
    # (use basic_block_forward_nhwc directly).
    out_nhwc = basic_block_forward_nhwc(jnp.transpose(x_nchw, (0, 2, 3, 1)),
                                        params, stride)
    return jnp.transpose(out_nhwc, (0, 3, 1, 2))


# ------------------------------ references ----------------------------------
def _conv_ref(x, w, stride, pad, cast_bf16):
    if cast_bf16:
        x = x.astype(jnp.bfloat16)
        w = w.astype(jnp.bfloat16)
    return jax.lax.conv_general_dilated(
        x, w, (stride, stride), [(pad, pad), (pad, pad)],
        dimension_numbers=("NCHW", "OIHW", "NCHW"),
        preferred_element_type=jnp.float32)


def _bn_ref(y, g, b):
    mean = jnp.mean(y, axis=(0, 2, 3), keepdims=True)
    var = jnp.mean((y - mean) ** 2, axis=(0, 2, 3), keepdims=True)
    return ((y - mean) * jax.lax.rsqrt(var + EPS) * g.reshape(1, -1, 1, 1)
            + b.reshape(1, -1, 1, 1))


def basic_block_ref(x, params, stride, cast_bf16=False):
    out = jax.nn.relu(_bn_ref(_conv_ref(x, params["w1"], stride, 1, cast_bf16),
                              params["g1"], params["b1"]))
    out = _bn_ref(_conv_ref(out, params["w2"], 1, 1, cast_bf16),
                  params["g2"], params["b2"])
    if "wsc" in params:
        sc = _bn_ref(_conv_ref(x, params["wsc"], stride, 0, cast_bf16),
                     params["gsc"], params["bsc"])
    else:
        sc = x
    return out + sc


# ------------------------------ parameter init -------------------------------
def init_params(key, in_planes, planes, stride):
    ks = jax.random.split(key, 8)
    p = {
        "w1": 0.2 * jax.random.normal(ks[0], (planes, in_planes, 3, 3), jnp.float32),
        "g1": 1.0 + 0.1 * jax.random.normal(ks[1], (planes,), jnp.float32),
        "b1": 0.1 * jax.random.normal(ks[2], (planes,), jnp.float32),
        "w2": 0.2 * jax.random.normal(ks[3], (planes, planes, 3, 3), jnp.float32),
        "g2": 1.0 + 0.1 * jax.random.normal(ks[4], (planes,), jnp.float32),
        "b2": 0.1 * jax.random.normal(ks[5], (planes,), jnp.float32),
    }
    if stride != 1 or in_planes != planes:
        p["wsc"] = 0.2 * jax.random.normal(ks[6], (planes, in_planes, 1, 1), jnp.float32)
        p["gsc"] = jnp.ones((planes,), jnp.float32)
        p["bsc"] = jnp.zeros((planes,), jnp.float32)
    return p


if __name__ == "__main__":
    key = jax.random.PRNGKey(0)
    kx, k1, k2 = jax.random.split(key, 3)
    x = jax.random.normal(kx, (2, 4, 16, 16), jnp.float32)   # NCHW, like PyTorch

    fwd = jax.jit(basic_block_forward, static_argnums=2)

    # BasicBlock(in_planes=4, planes=8, stride=2): projection-shortcut path.
    params_a = init_params(k1, 4, 8, 2)
    y_a = fwd(x, params_a, 2)
    # BasicBlock(in_planes=8, planes=8, stride=1): identity-shortcut path.
    params_b = init_params(k2, 8, 8, 1)
    y_b = fwd(y_a, params_b, 1)
    jax.block_until_ready(y_b)

    assert y_a.shape == (2, 8, 8, 8), y_a.shape
    assert y_b.shape == (2, 8, 8, 8), y_b.shape

    # Check against a reference with bf16-MXU / f32-accumulate numerics (the
    # kernel additionally keeps inter-pass activations in bf16, hence the
    # slightly looser tolerance than a pure bit-match).
    ref_a16 = basic_block_ref(x, params_a, 2, cast_bf16=True)
    ref_b16 = basic_block_ref(y_a, params_b, 1, cast_bf16=True)
    assert jnp.allclose(y_a, ref_a16, atol=6e-2, rtol=6e-2), \
        float(jnp.max(jnp.abs(y_a - ref_a16)))
    assert jnp.allclose(y_b, ref_b16, atol=6e-2, rtol=6e-2), \
        float(jnp.max(jnp.abs(y_b - ref_b16)))

    # Sanity check against the pure-f32 reference (looser: bf16 MXU operands
    # and bf16 inter-pass activations).
    ref_a32 = basic_block_ref(x, params_a, 2)
    assert jnp.allclose(y_a, ref_a32, atol=1.5e-1, rtol=1.5e-1), \
        float(jnp.max(jnp.abs(y_a - ref_a32)))

    print("KERNEL_OK")
</pallas_src>

<mosaic_0001>
module attributes {stable_mosaic.version = 11 : i64} {
  func.func @kernel(%arg0: i32, %arg1: memref<1x64x16xbf16, #tpu.memory_space<vmem>>, %arg2: memref<1x8xf32, #tpu.memory_space<vmem>>, %arg3: memref<1x8xf32, #tpu.memory_space<vmem>>, %arg4: memref<72x8xbf16, #tpu.memory_space<vmem>>, %arg5: memref<64x9xf32, #tpu.memory_space<vmem>>, %arg6: memref<1x64x8xbf16, #tpu.memory_space<vmem>>, %arg7: memref<1x2x8xf32, #tpu.memory_space<vmem>>, %arg8: memref<89x8xf32, #tpu.memory_space<vmem>>) attributes {dimension_semantics = [#tpu.dimension_semantics<parallel>], iteration_bounds = array<i64: 2>, scalar_prefetch = 0 : i64, scratch_operands = 1 : i64, tpu.core_type = #tpu.core_type<tc>, window_params = [{transform_indices = @transform_0, window_bounds = array<i64: 1, 64, 16>}, {pipeline_mode = #tpu.pipeline_mode<synchronous>, transform_indices = @transform_1, window_bounds = array<i64: 1, 8>}, {pipeline_mode = #tpu.pipeline_mode<synchronous>, transform_indices = @transform_2, window_bounds = array<i64: 1, 8>}, {pipeline_mode = #tpu.pipeline_mode<synchronous>, transform_indices = @transform_3, window_bounds = array<i64: 72, 8>}, {pipeline_mode = #tpu.pipeline_mode<synchronous>, transform_indices = @transform_4, window_bounds = array<i64: 64, 9>}, {transform_indices = @transform_5, window_bounds = array<i64: 1, 64, 8>}, {transform_indices = @transform_6, window_bounds = array<i64: 1, 2, 8>}]} {
    %c0 = arith.constant 0 : index
    %c0_0 = arith.constant 0 : index
    %c0_1 = arith.constant 0 : index
    %0 = vector.load %arg1[%c0, %c0_0, %c0_1] : memref<1x64x16xbf16, #tpu.memory_space<vmem>>, vector<1x64x16xbf16>
    %1 = vector.shape_cast %0 : vector<1x64x16xbf16> to vector<64x16xbf16>
    %2 = arith.extf %1 : vector<64x16xbf16> to vector<64x16xf32>
    %3 = vector.extract_strided_slice %2 {offsets = [0, 0], sizes = [64, 8], strides = [1, 1]} : vector<64x16xf32> to vector<64x8xf32>
    %c0_2 = arith.constant 0 : index
    %c0_3 = arith.constant 0 : index
    %4 = vector.load %arg2[%c0_2, %c0_3] : memref<1x8xf32, #tpu.memory_space<vmem>>, vector<1x8xf32>
    %5 = vector.broadcast %4 : vector<1x8xf32> to vector<64x8xf32>
    %6 = arith.mulf %3, %5 : vector<64x8xf32>
    %c0_4 = arith.constant 0 : index
    %c0_5 = arith.constant 0 : index
    %7 = vector.load %arg3[%c0_4, %c0_5] : memref<1x8xf32, #tpu.memory_space<vmem>>, vector<1x8xf32>
    %8 = vector.broadcast %7 : vector<1x8xf32> to vector<64x8xf32>
    %9 = arith.addf %6, %8 : vector<64x8xf32>
    %cst = arith.constant 0.000000e+00 : f32
    %10 = vector.broadcast %cst : f32 to vector<64x8xf32>
    %11 = arith.maximumf %9, %10 : vector<64x8xf32>
    %c16 = arith.constant 16 : index
    %c0_6 = arith.constant 0 : index
    %12 = vector.load %arg8[%c16, %c0_6] : memref<89x8xf32, #tpu.memory_space<vmem>>, vector<64x8xf32>
    tpu.vector_store %arg8[%c16, %c0_6], %11 {strides = array<i32>} : memref<89x8xf32, #tpu.memory_space<vmem>>, vector<64x8xf32>,
    %c0_7 = arith.constant 0 : index
    %c0_8 = arith.constant 0 : index
    %13 = vector.load %arg5[%c0_7, %c0_8] : memref<64x9xf32, #tpu.memory_space<vmem>>, vector<64x9xf32>
    %c7 = arith.constant 7 : index
    %c0_9 = arith.constant 0 : index
    %14 = vector.load %arg8[%c7, %c0_9] : memref<89x8xf32, #tpu.memory_space<vmem>>, vector<64x8xf32>
    %15 = vector.extract_strided_slice %13 {offsets = [0, 0], sizes = [64, 1], strides = [1, 1]} : vector<64x9xf32> to vector<64x1xf32>
    %cst_10 = arith.constant 0.000000e+00 : f32
    %16 = vector.broadcast %cst_10 : f32 to vector<64x1xf32>
    %17 = arith.cmpf one, %15, %16 : vector<64x1xf32>
    %cst_11 = arith.constant 0.000000e+00 : f32
    %18 = vector.shape_cast %17 : vector<64x1xi1> to vector<64x1xi1>
    %19 = vector.broadcast %18 : vector<64x1xi1> to vector<64x8xi1>
    %20 = vector.broadcast %cst_11 : f32 to vector<64x8xf32>
    %21 = arith.select %19, %14, %20 : vector<64x8xi1>, vector<64x8xf32>
    %c8 = arith.constant 8 : index
    %c0_12 = arith.constant 0 : index
    %22 = vector.load %arg8[%c8, %c0_12] : memref<89x8xf32, #tpu.memory_space<vmem>>, vector<64x8xf32>
    %23 = vector.extract_strided_slice %13 {offsets = [0, 1], sizes = [64, 1], strides = [1, 1]} : vector<64x9xf32> to vector<64x1xf32>
    %cst_13 = arith.constant 0.000000e+00 : f32
    %24 = vector.broadcast %cst_13 : f32 to vector<64x1xf32>
    %25 = arith.cmpf one, %23, %24 : vector<64x1xf32>
    %cst_14 = arith.constant 0.000000e+00 : f32
    %26 = vector.shape_cast %25 : vector<64x1xi1> to vector<64x1xi1>
    %27 = vector.broadcast %26 : vector<64x1xi1> to vector<64x8xi1>
    %28 = vector.broadcast %cst_14 : f32 to vector<64x8xf32>
    %29 = arith.select %27, %22, %28 : vector<64x8xi1>, vector<64x8xf32>
    %c9 = arith.constant 9 : index
    %c0_15 = arith.constant 0 : index
    %30 = vector.load %arg8[%c9, %c0_15] : memref<89x8xf32, #tpu.memory_space<vmem>>, vector<64x8xf32>
    %31 = vector.extract_strided_slice %13 {offsets = [0, 2], sizes = [64, 1], strides = [1, 1]} : vector<64x9xf32> to vector<64x1xf32>
    %cst_16 = arith.constant 0.000000e+00 : f32
    %32 = vector.broadcast %cst_16 : f32 to vector<64x1xf32>
    %33 = arith.cmpf one, %31, %32 : vector<64x1xf32>
    %cst_17 = arith.constant 0.000000e+00 : f32
    %34 = vector.shape_cast %33 : vector<64x1xi1> to vector<64x1xi1>
    %35 = vector.broadcast %34 : vector<64x1xi1> to vector<64x8xi1>
    %36 = vector.broadcast %cst_17 : f32 to vector<64x8xf32>
    %37 = arith.select %35, %30, %36 : vector<64x8xi1>, vector<64x8xf32>
    %c15 = arith.constant 15 : index
    %c0_18 = arith.constant 0 : index
    %38 = vector.load %arg8[%c15, %c0_18] : memref<89x8xf32, #tpu.memory_space<vmem>>, vector<64x8xf32>
    %39 = vector.extract_strided_slice %13 {offsets = [0, 3], sizes = [64, 1], strides = [1, 1]} : vector<64x9xf32> to vector<64x1xf32>
    %cst_19 = arith.constant 0.000000e+00 : f32
    %40 = vector.broadcast %cst_19 : f32 to vector<64x1xf32>
    %41 = arith.cmpf one, %39, %40 : vector<64x1xf32>
    %cst_20 = arith.constant 0.000000e+00 : f32
    %42 = vector.shape_cast %41 : vector<64x1xi1> to vector<64x1xi1>
    %43 = vector.broadcast %42 : vector<64x1xi1> to vector<64x8xi1>
    %44 = vector.broadcast %cst_20 : f32 to vector<64x8xf32>
    %45 = arith.select %43, %38, %44 : vector<64x8xi1>, vector<64x8xf32>
    %c16_21 = arith.constant 16 : index
    %c0_22 = arith.constant 0 : index
    %46 = vector.load %arg8[%c16_21, %c0_22] : memref<89x8xf32, #tpu.memory_space<vmem>>, vector<64x8xf32>
    %c17 = arith.constant 17 : index
    %c0_23 = arith.constant 0 : index
    %47 = vector.load %arg8[%c17, %c0_23] : memref<89x8xf32, #tpu.memory_space<vmem>>, vector<64x8xf32>
    %48 = vector.extract_strided_slice %13 {offsets = [0, 5], sizes = [64, 1], strides = [1, 1]} : vector<64x9xf32> to vector<64x1xf32>
    %cst_24 = arith.constant 0.000000e+00 : f32
    %49 = vector.broadcast %cst_24 : f32 to vector<64x1xf32>
    %50 = arith.cmpf one, %48, %49 : vector<64x1xf32>
    %cst_25 = arith.constant 0.000000e+00 : f32
    %51 = vector.shape_cast %50 : vector<64x1xi1> to vector<64x1xi1>
    %52 = vector.broadcast %51 : vector<64x1xi1> to vector<64x8xi1>
    %53 = vector.broadcast %cst_25 : f32 to vector<64x8xf32>
    %54 = arith.select %52, %47, %53 : vector<64x8xi1>, vector<64x8xf32>
    %c23 = arith.constant 23 : index
    %c0_26 = arith.constant 0 : index
    %55 = vector.load %arg8[%c23, %c0_26] : memref<89x8xf32, #tpu.memory_space<vmem>>, vector<64x8xf32>
    %56 = vector.extract_strided_slice %13 {offsets = [0, 6], sizes = [64, 1], strides = [1, 1]} : vector<64x9xf32> to vector<64x1xf32>
    %cst_27 = arith.constant 0.000000e+00 : f32
    %57 = vector.broadcast %cst_27 : f32 to vector<64x1xf32>
    %58 = arith.cmpf one, %56, %57 : vector<64x1xf32>
    %cst_28 = arith.constant 0.000000e+00 : f32
    %59 = vector.shape_cast %58 : vector<64x1xi1> to vector<64x1xi1>
    %60 = vector.broadcast %59 : vector<64x1xi1> to vector<64x8xi1>
    %61 = vector.broadcast %cst_28 : f32 to vector<64x8xf32>
    %62 = arith.select %60, %55, %61 : vector<64x8xi1>, vector<64x8xf32>
    %c24 = arith.constant 24 : index
    %c0_29 = arith.constant 0 : index
    %63 = vector.load %arg8[%c24, %c0_29] : memref<89x8xf32, #tpu.memory_space<vmem>>, vector<64x8xf32>
    %64 = vector.extract_strided_slice %13 {offsets = [0, 7], sizes = [64, 1], strides = [1, 1]} : vector<64x9xf32> to vector<64x1xf32>
    %cst_30 = arith.constant 0.000000e+00 : f32
    %65 = vector.broadcast %cst_30 : f32 to vector<64x1xf32>
    %66 = arith.cmpf one, %64, %65 : vector<64x1xf32>
    %cst_31 = arith.constant 0.000000e+00 : f32
    %67 = vector.shape_cast %66 : vector<64x1xi1> to vector<64x1xi1>
    %68 = vector.broadcast %67 : vector<64x1xi1> to vector<64x8xi1>
    %69 = vector.broadcast %cst_31 : f32 to vector<64x8xf32>
    %70 = arith.select %68, %63, %69 : vector<64x8xi1>, vector<64x8xf32>
    %c25 = arith.constant 25 : index
    %c0_32 = arith.constant 0 : index
    %71 = vector.load %arg8[%c25, %c0_32] : memref<89x8xf32, #tpu.memory_space<vmem>>, vector<64x8xf32>
    %72 = vector.extract_strided_slice %13 {offsets = [0, 8], sizes = [64, 1], strides = [1, 1]} : vector<64x9xf32> to vector<64x1xf32>
    %cst_33 = arith.constant 0.000000e+00 : f32
    %73 = vector.broadcast %cst_33 : f32 to vector<64x1xf32>
    %74 = arith.cmpf one, %72, %73 : vector<64x1xf32>
    %cst_34 = arith.constant 0.000000e+00 : f32
    %75 = vector.shape_cast %74 : vector<64x1xi1> to vector<64x1xi1>
    %76 = vector.broadcast %75 : vector<64x1xi1> to vector<64x8xi1>
    %77 = vector.broadcast %cst_34 : f32 to vector<64x8xf32>
    %78 = arith.select %76, %71, %77 : vector<64x8xi1>, vector<64x8xf32>
    %79 = tpu.concatenate %21, %29, %37, %45, %46, %54, %62, %70, %78 in 1 : vector<64x8xf32>, vector<64x8xf32>, vector<64x8xf32>, vector<64x8xf32>, vector<64x8xf32>, vector<64x8xf32>, vector<64x8xf32>, vector<64x8xf32>, vector<64x8xf32> -> vector<64x72xf32>
    %80 = arith.truncf %79 : vector<64x72xf32> to vector<64x72xbf16>
    %c0_35 = arith.constant 0 : index
    %c0_36 = arith.constant 0 : index
    %81 = vector.load %arg4[%c0_35, %c0_36] : memref<72x8xbf16, #tpu.memory_space<vmem>>, vector<72x8xbf16>
    %cst_37 = arith.constant dense<0.000000e+00> : vector<64x8xf32>
    %82 = tpu.matmul %80, %81, %cst_37 {dimension_numbers = #tpu.dot_dimension_numbers<[1], [0], [0], [1], [0, 0, 1, 1], [], []>} : vector<64x72xbf16>, vector<72x8xbf16>, vector<64x8xf32> -> vector<64x8xf32>
    %cst_38 = arith.constant dense<0.000000e+00> : vector<8xf32>
    %83 = vector.multi_reduction <add>, %82, %cst_38 [0] : vector<64x8xf32> to vector<8xf32>
    %84 = vector.shape_cast %83 : vector<8xf32> to vector<1x8xf32>
    %85 = arith.mulf %82, %82 : vector<64x8xf32>
    %cst_39 = arith.constant dense<0.000000e+00> : vector<8xf32>
    %86 = vector.multi_reduction <add>, %85, %cst_39 [0] : vector<64x8xf32> to vector<8xf32>
    %87 = vector.shape_cast %86 : vector<8xf32> to vector<1x8xf32>
    %88 = tpu.concatenate %84, %87 in 0 : vector<1x8xf32>, vector<1x8xf32> -> vector<2x8xf32>
    %c0_40 = arith.constant 0 : index
    %c0_41 = arith.constant 0 : index
    %c0_42 = arith.constant 0 : index
    %89 = vector.load %arg7[%c0_40, %c0_41, %c0_42] : memref<1x2x8xf32, #tpu.memory_space<vmem>>, vector<1x2x8xf32>
    %90 = vector.shape_cast %89 : vector<1x2x8xf32> to vector<2x8xf32>
    %91 = vector.shape_cast %88 : vector<2x8xf32> to vector<1x2x8xf32>
    tpu.vector_store %arg7[%c0_40, %c0_41, %c0_42], %91 {strides = array<i32>} : memref<1x2x8xf32, #tpu.memory_space<vmem>>, vector<1x2x8xf32>,
    %92 = arith.truncf %82 : vector<64x8xf32> to vector<64x8xbf16>
    %c0_43 = arith.constant 0 : index
    %c0_44 = arith.constant 0 : index
    %c0_45 = arith.constant 0 : index
    %93 = vector.load %arg6[%c0_43, %c0_44, %c0_45] : memref<1x64x8xbf16, #tpu.memory_space<vmem>>, vector<1x64x8xbf16>
    %94 = vector.shape_cast %93 : vector<1x64x8xbf16> to vector<64x8xbf16>
    %95 = vector.shape_cast %92 : vector<64x8xbf16> to vector<1x64x8xbf16>
    tpu.vector_store %arg6[%c0_43, %c0_44, %c0_45], %95 {strides = array<i32>} : memref<1x64x8xbf16, #tpu.memory_space<vmem>>, vector<1x64x8xbf16>,
    return
  }
  func.func @transform_0(%arg0: i32) -> (i32, i32, i32) {
    %c0_i32 = arith.constant 0 : i32
    %c0_i32_0 = arith.constant 0 : i32
    %c0_i32_1 = arith.constant 0 : i32
    return %arg0, %c0_i32, %c0_i32_0 : i32, i32, i32
  }
  func.func @transform_1(%arg0: i32) -> (i32, i32) {
    %c0_i32 = arith.constant 0 : i32
    %c0_i32_0 = arith.constant 0 : i32
    %c0_i32_1 = arith.constant 0 : i32
    return %c0_i32, %c0_i32_0 : i32, i32
  }
  func.func @transform_2(%arg0: i32) -> (i32, i32) {
    %c0_i32 = arith.constant 0 : i32
    %c0_i32_0 = arith.constant 0 : i32
    %c0_i32_1 = arith.constant 0 : i32
    return %c0_i32, %c0_i32_0 : i32, i32
  }
  func.func @transform_3(%arg0: i32) -> (i32, i32) {
    %c0_i32 = arith.constant 0 : i32
    %c0_i32_0 = arith.constant 0 : i32
    %c0_i32_1 = arith.constant 0 : i32
    return %c0_i32, %c0_i32_0 : i32, i32
  }
  func.func @transform_4(%arg0: i32) -> (i32, i32) {
    %c0_i32 = arith.constant 0 : i32
    %c0_i32_0 = arith.constant 0 : i32
    %c0_i32_1 = arith.constant 0 : i32
    return %c0_i32, %c0_i32_0 : i32, i32
  }
  func.func @transform_5(%arg0: i32) -> (i32, i32, i32) {
    %c0_i32 = arith.constant 0 : i32
    %c0_i32_0 = arith.constant 0 : i32
    %c0_i32_1 = arith.constant 0 : i32
    return %arg0, %c0_i32, %c0_i32_0 : i32, i32, i32
  }
  func.func @transform_6(%arg0: i32) -> (i32, i32, i32) {
    %c0_i32 = arith.constant 0 : i32
    %c0_i32_0 = arith.constant 0 : i32
    %c0_i32_1 = arith.constant 0 : i32
    return %arg0, %c0_i32, %c0_i32_0 : i32, i32, i32
  }
}

module attributes {stable_mosaic.version = 11 : i64} {
  func.func @_pass1_im2col_kernel(%arg0: i32, %arg1: memref<1x64x36xbf16, #tpu.memory_space<vmem>>, %arg2: memref<36x16xbf16, #tpu.memory_space<vmem>>, %arg3: memref<1x64x16xbf16, #tpu.memory_space<vmem>>, %arg4: memref<1x2x16xf32, #tpu.memory_space<vmem>>) attributes {dimension_semantics = [#tpu.dimension_semantics<parallel>], iteration_bounds = array<i64: 2>, scalar_prefetch = 0 : i64, scratch_operands = 0 : i64, tpu.core_type = #tpu.core_type<tc>, window_params = [{transform_indices = @transform_0, window_bounds = array<i64: 1, 64, 36>}, {pipeline_mode = #tpu.pipeline_mode<synchronous>, transform_indices = @transform_1, window_bounds = array<i64: 36, 16>}, {transform_indices = @transform_2, window_bounds = array<i64: 1, 64, 16>}, {transform_indices = @transform_3, window_bounds = array<i64: 1, 2, 16>}]} {
    %c0 = arith.constant 0 : index
    %c0_0 = arith.constant 0 : index
    %c0_1 = arith.constant 0 : index
    %0 = vector.load %arg1[%c0, %c0_0, %c0_1] : memref<1x64x36xbf16, #tpu.memory_space<vmem>>, vector<1x64x36xbf16>
    %1 = vector.shape_cast %0 : vector<1x64x36xbf16> to vector<64x36xbf16>
    %c0_2 = arith.constant 0 : index
    %c0_3 = arith.constant 0 : index
    %2 = vector.load %arg2[%c0_2, %c0_3] : memref<36x16xbf16, #tpu.memory_space<vmem>>, vector<36x16xbf16>
    %cst = arith.constant dense<0.000000e+00> : vector<64x16xf32>
    %3 = tpu.matmul %1, %2, %cst {dimension_numbers = #tpu.dot_dimension_numbers<[1], [0], [0], [1], [0, 0, 1, 1], [], []>} : vector<64x36xbf16>, vector<36x16xbf16>, vector<64x16xf32> -> vector<64x16xf32>
    %cst_4 = arith.constant dense<0.000000e+00> : vector<16xf32>
    %4 = vector.multi_reduction <add>, %3, %cst_4 [0] : vector<64x16xf32> to vector<16xf32>
    %5 = vector.shape_cast %4 : vector<16xf32> to vector<1x16xf32>
    %6 = arith.mulf %3, %3 : vector<64x16xf32>
    %cst_5 = arith.constant dense<0.000000e+00> : vector<16xf32>
    %7 = vector.multi_reduction <add>, %6, %cst_5 [0] : vector<64x16xf32> to vector<16xf32>
    %8 = vector.shape_cast %7 : vector<16xf32> to vector<1x16xf32>
    %9 = tpu.concatenate %5, %8 in 0 : vector<1x16xf32>, vector<1x16xf32> -> vector<2x16xf32>
    %c0_6 = arith.constant 0 : index
    %c0_7 = arith.constant 0 : index
    %c0_8 = arith.constant 0 : index
    %10 = vector.load %arg4[%c0_6, %c0_7, %c0_8] : memref<1x2x16xf32, #tpu.memory_space<vmem>>, vector<1x2x16xf32>
    %11 = vector.shape_cast %10 : vector<1x2x16xf32> to vector<2x16xf32>
    %12 = vector.shape_cast %9 : vector<2x16xf32> to vector<1x2x16xf32>
    tpu.vector_store %arg4[%c0_6, %c0_7, %c0_8], %12 {strides = array<i32>} : memref<1x2x16xf32, #tpu.memory_space<vmem>>, vector<1x2x16xf32>,
    %13 = arith.truncf %3 : vector<64x16xf32> to vector<64x16xbf16>
    %c0_9 = arith.constant 0 : index
    %c0_10 = arith.constant 0 : index
    %c0_11 = arith.constant 0 : index
    %14 = vector.load %arg3[%c0_9, %c0_10, %c0_11] : memref<1x64x16xbf16, #tpu.memory_space<vmem>>, vector<1x64x16xbf16>
    %15 = vector.shape_cast %14 : vector<1x64x16xbf16> to vector<64x16xbf16>
    %16 = vector.shape_cast %13 : vector<64x16xbf16> to vector<1x64x16xbf16>
    tpu.vector_store %arg3[%c0_9, %c0_10, %c0_11], %16 {strides = array<i32>} : memref<1x64x16xbf16, #tpu.memory_space<vmem>>, vector<1x64x16xbf16>,
    return
  }
  func.func @transform_0(%arg0: i32) -> (i32, i32, i32) {
    %c0_i32 = arith.constant 0 : i32
    %c0_i32_0 = arith.constant 0 : i32
    %c0_i32_1 = arith.constant 0 : i32
    return %arg0, %c0_i32, %c0_i32_0 : i32, i32, i32
  }
  func.func @transform_1(%arg0: i32) -> (i32, i32) {
    %c0_i32 = arith.constant 0 : i32
    %c0_i32_0 = arith.constant 0 : i32
    %c0_i32_1 = arith.constant 0 : i32
    return %c0_i32, %c0_i32_0 : i32, i32
  }
  func.func @transform_2(%arg0: i32) -> (i32, i32, i32) {
    %c0_i32 = arith.constant 0 : i32
    %c0_i32_0 = arith.constant 0 : i32
    %c0_i32_1 = arith.constant 0 : i32
    return %arg0, %c0_i32, %c0_i32_0 : i32, i32, i32
  }
  func.func @transform_3(%arg0: i32) -> (i32, i32, i32) {
    %c0_i32 = arith.constant 0 : i32
    %c0_i32_0 = arith.constant 0 : i32
    %c0_i32_1 = arith.constant 0 : i32
    return %arg0, %c0_i32, %c0_i32_0 : i32, i32, i32
  }
}

module attributes {stable_mosaic.version = 11 : i64} {
  func.func @kernel(%arg0: i32, %arg1: memref<64x8xbf16, #tpu.memory_space<vmem>>, %arg2: memref<64x16xbf16, #tpu.memory_space<vmem>>, %arg3: memref<1x8xf32, #tpu.memory_space<vmem>>, %arg4: memref<1x8xf32, #tpu.memory_space<vmem>>, %arg5: memref<1x8xf32, #tpu.memory_space<vmem>>, %arg6: memref<1x8xf32, #tpu.memory_space<vmem>>, %arg7: memref<64x8xf32, #tpu.memory_space<vmem>>) attributes {dimension_semantics = [#tpu.dimension_semantics<parallel>], iteration_bounds = array<i64: 2>, scalar_prefetch = 0 : i64, scratch_operands = 0 : i64, tpu.core_type = #tpu.core_type<tc>, window_params = [{transform_indices = @transform_0, window_bounds = array<i64: 64, 8>}, {transform_indices = @transform_1, window_bounds = array<i64: 64, 16>}, {pipeline_mode = #tpu.pipeline_mode<synchronous>, transform_indices = @transform_2, window_bounds = array<i64: 1, 8>}, {pipeline_mode = #tpu.pipeline_mode<synchronous>, transform_indices = @transform_3, window_bounds = array<i64: 1, 8>}, {pipeline_mode = #tpu.pipeline_mode<synchronous>, transform_indices = @transform_4, window_bounds = array<i64: 1, 8>}, {pipeline_mode = #tpu.pipeline_mode<synchronous>, transform_indices = @transform_5, window_bounds = array<i64: 1, 8>}, {transform_indices = @transform_6, window_bounds = array<i64: 64, 8>}]} {
    %c0 = arith.constant 0 : index
    %c0_0 = arith.constant 0 : index
    %0 = vector.load %arg1[%c0, %c0_0] : memref<64x8xbf16, #tpu.memory_space<vmem>>, vector<64x8xbf16>
    %1 = arith.extf %0 : vector<64x8xbf16> to vector<64x8xf32>
    %c0_1 = arith.constant 0 : index
    %c0_2 = arith.constant 0 : index
    %2 = vector.load %arg2[%c0_1, %c0_2] : memref<64x16xbf16, #tpu.memory_space<vmem>>, vector<64x16xbf16>
    %3 = arith.extf %2 : vector<64x16xbf16> to vector<64x16xf32>
    %4 = vector.extract_strided_slice %3 {offsets = [0, 8], sizes = [64, 8], strides = [1, 1]} : vector<64x16xf32> to vector<64x8xf32>
    %c0_3 = arith.constant 0 : index
    %c0_4 = arith.constant 0 : index
    %5 = vector.load %arg3[%c0_3, %c0_4] : memref<1x8xf32, #tpu.memory_space<vmem>>, vector<1x8xf32>
    %6 = vector.broadcast %5 : vector<1x8xf32> to vector<64x8xf32>
    %7 = arith.mulf %1, %6 : vector<64x8xf32>
    %c0_5 = arith.constant 0 : index
    %c0_6 = arith.constant 0 : index
    %8 = vector.load %arg4[%c0_5, %c0_6] : memref<1x8xf32, #tpu.memory_space<vmem>>, vector<1x8xf32>
    %9 = vector.broadcast %8 : vector<1x8xf32> to vector<64x8xf32>
    %10 = arith.addf %7, %9 : vector<64x8xf32>
    %c0_7 = arith.constant 0 : index
    %c0_8 = arith.constant 0 : index
    %11 = vector.load %arg5[%c0_7, %c0_8] : memref<1x8xf32, #tpu.memory_space<vmem>>, vector<1x8xf32>
    %12 = vector.broadcast %11 : vector<1x8xf32> to vector<64x8xf32>
    %13 = arith.mulf %4, %12 : vector<64x8xf32>
    %14 = arith.addf %10, %13 : vector<64x8xf32>
    %c0_9 = arith.constant 0 : index
    %c0_10 = arith.constant 0 : index
    %15 = vector.load %arg6[%c0_9, %c0_10] : memref<1x8xf32, #tpu.memory_space<vmem>>, vector<1x8xf32>
    %16 = vector.broadcast %15 : vector<1x8xf32> to vector<64x8xf32>
    %17 = arith.addf %14, %16 : vector<64x8xf32>
    %c0_11 = arith.constant 0 : index
    %c0_12 = arith.constant 0 : index
    %18 = vector.load %arg7[%c0_11, %c0_12] : memref<64x8xf32, #tpu.memory_space<vmem>>, vector<64x8xf32>
    tpu.vector_store %arg7[%c0_11, %c0_12], %17 {strides = array<i32>} : memref<64x8xf32, #tpu.memory_space<vmem>>, vector<64x8xf32>,
    return
  }
  func.func @transform_0(%arg0: i32) -> (i32, i32) {
    %c0_i32 = arith.constant 0 : i32
    %c0_i32_0 = arith.constant 0 : i32
    return %arg0, %c0_i32 : i32, i32
  }
  func.func @transform_1(%arg0: i32) -> (i32, i32) {
    %c0_i32 = arith.constant 0 : i32
    %c0_i32_0 = arith.constant 0 : i32
    return %arg0, %c0_i32 : i32, i32
  }
  func.func @transform_2(%arg0: i32) -> (i32, i32) {
    %c0_i32 = arith.constant 0 : i32
    %c0_i32_0 = arith.constant 0 : i32
    %c0_i32_1 = arith.constant 0 : i32
    return %c0_i32, %c0_i32_0 : i32, i32
  }
  func.func @transform_3(%arg0: i32) -> (i32, i32) {
    %c0_i32 = arith.constant 0 : i32
    %c0_i32_0 = arith.constant 0 : i32
    %c0_i32_1 = arith.constant 0 : i32
    return %c0_i32, %c0_i32_0 : i32, i32
  }
  func.func @transform_4(%arg0: i32) -> (i32, i32) {
    %c0_i32 = arith.constant 0 : i32
    %c0_i32_0 = arith.constant 0 : i32
    %c0_i32_1 = arith.constant 0 : i32
    return %c0_i32, %c0_i32_0 : i32, i32
  }
  func.func @transform_5(%arg0: i32) -> (i32, i32) {
    %c0_i32 = arith.constant 0 : i32
    %c0_i32_0 = arith.constant 0 : i32
    %c0_i32_1 = arith.constant 0 : i32
    return %c0_i32, %c0_i32_0 : i32, i32
  }
  func.func @transform_6(%arg0: i32) -> (i32, i32) {
    %c0_i32 = arith.constant 0 : i32
    %c0_i32_0 = arith.constant 0 : i32
    return %arg0, %c0_i32 : i32, i32
  }
}

</mosaic_0001>

<bundles_post_ra>
// kernel: basic_block_forward.5
= control target key start
LH: loop header
LB: loop body
LE: loop exit
PB: predicated region body
PF: predicated region fallthrough
CT: control target
= control target key end

     0   :  { %s598_s21 = smov 0   ;;  %s656_s0 = inlined_call_operand.vmem [shape: bf16[128,8], index: 0, kind: input, shape index: {}]   ;;  %s657_s1 = inlined_call_operand.vmem [shape: bf16[128,16], index: 1, kind: input, shape index: {}]   ;;  %s658_s2 = inlined_call_operand.vmem [shape: f32[1,8], index: 2, kind: input, shape index: {}]   ;;  %s659_s3 = inlined_call_operand.vmem [shape: f32[1,8], index: 3, kind: input, shape index: {}]   ;;  %s660_s4 = inlined_call_operand.vmem [shape: f32[1,8], index: 4, kind: input, shape index: {}]   ;;  %s661_s5 = inlined_call_operand.vmem [shape: f32[1,8], index: 5, kind: input, shape index: {}]   ;;  %s662_s6 = inlined_call_operand.vmem [shape: f32[128,8], index: 6, kind: output, shape index: {}]  }
   0x1 LB: > { %s488_s22 = sadd.s32 4294967295, %s559_s21   ;;  %p492_p0 = scmp.ge.s32.totalorder %s559_s21, 1  ;;  %s559_s21 = sphi %s598_s21, %s16_s21  }
   0x2   : > { %p224_p1 = scmp.lt.s32.totalorder %s559_s21, 3 }
   0x4   : > { %p225_p2 = pnand %p492_p0, %p224_p1 }
   0x5   : > { %v501_v0 = vld [vmem:[%s660_s4] ss:$0 sm:$0xff] (!%p225_p2)  ;;  %s561_s25 = smov (!%p225_p2), 8   ;;  %s493_s26 = sshll.u32 (!%p225_p2), %s488_s22, 3  ;;  %vm411_vm0 = vcmask (!%p225_p2), 64512  }
   0x6   : > { %228 = sbr.rel (%p225_p2) target bundleno = 255 (0xff), region = 44  ;;  %345 = vrot.lane.b32.xlu0 (!%p225_p2), %v501_v0, %s561_s25  ;;  %p260_p3 = scmp.lt.s32.totalorder (!%p225_p2), %s493_s26, 15  ;;  %v499_v26 = vld [vmem:[%s658_s2] ss:$0 sm:$0xff] (!%p225_p2) }
   0x7   : > { %s562_s7 = smov (!%p225_p2), 120   ;;  %v500_v32 = vld [vmem:[%s659_s3] ss:$0 sm:$0xff] (!%p225_p2) }
   0x8   : > { %v502_v40 = vld [vmem:[%s661_s5] ss:$0 sm:$0xff] (!%p225_p2) }
   0xd   : > { %s664_s26 = smov (!%p260_p3, %s493_s26), 15 }
   0xe   : > { %s494_s27 = sshll.u32 %s664_s26, 2  ;;  %s498_s15 = sshll.u32 %s664_s26, 3 }
   0xf   : > { %s269_s30 = scalar_lea.vmem %s657_s1, %s494_s27  ;;  %s263_s10 = scalar_lea.vmem %s656_s0, %s494_s27 }
  0x10   : > { %v522_v1 = vld [vmem:[%s269_s30] sm:$0xff]   ;;  %v540_v4 = vld [vmem:[%s269_s30 + $0x8] sm:$0xff]   ;;  %v541_v10 = vld [vmem:[%s269_s30 + $0x10] sm:$0xff]   ;;  %s635_s20 = scalar_lea.vmem %s662_s6, %s498_s15 }
  0x11   : > { %v524_v2 = vunpack.c.h.bf16 %v522_v1  ;;  %v523_v3 = vunpack.c.l.bf16 %v522_v1  ;;  %v527_v8 = vunpack.c.l.bf16 %v540_v4  ;;  %v528_v9 = vunpack.c.h.bf16 %v540_v4  ;;  %v542_v15 = vld [vmem:[%s269_s30 + $0x18] sm:$0xff]   ;;  %v506_v22 = vld [vmem:[%s263_s10] sm:$0xff]   ;;  %v537_v25 = vld [vmem:[%s263_s10 + $0x8] sm:$0xff]  }
  0x12   : > { %v531_v13 = vunpack.c.l.bf16 %v541_v10  ;;  %v532_v14 = vunpack.c.h.bf16 %v541_v10  ;;  %v535_v18 = vunpack.c.l.bf16 %v542_v15  ;;  %v536_v19 = vunpack.c.h.bf16 %v542_v15  ;;  %v538_v31 = vld [vmem:[%s263_s10 + $0x10] sm:$0xff]   ;;  %v539_v39 = vld [vmem:[%s263_s10 + $0x18] sm:$0xff]  }
  0x13   : > { %v508_v23 = vunpack.c.h.bf16 %v506_v22  ;;  %v507_v24 = vunpack.c.l.bf16 %v506_v22  ;;  %v511_v27 = vunpack.c.l.bf16 %v537_v25  ;;  %v512_v28 = vunpack.c.h.bf16 %v537_v25 }
  0x14   : > { %v515_v35 = vunpack.c.l.bf16 %v538_v31  ;;  %v516_v36 = vunpack.c.h.bf16 %v538_v31  ;;  %v519_v49 = vunpack.c.l.bf16 %v539_v39  ;;  %v520_v50 = vunpack.c.h.bf16 %v539_v39 }
  0x15   : > { %v317_v29 = vmul.f32 %v508_v23, %v499_v26  ;;  %v316_v30 = vmul.f32 %v507_v24, %v499_v26  ;;  %v318_v33 = vmul.f32 %v511_v27, %v499_v26  ;;  %v319_v34 = vmul.f32 %v512_v28, %v499_v26 }
  0x16   : > { %v320_v45 = vmul.f32 %v515_v35, %v499_v26  ;;  %v321_v46 = vmul.f32 %v516_v36, %v499_v26  ;;  %v322_v59 = vmul.f32 %v519_v49, %v499_v26  ;;  %v323_v60 = vmul.f32 %v520_v50, %v499_v26 }
  0x17   : > { %v332_v37 = vadd.f32 %v500_v32, %v317_v29  ;;  %v331_v38 = vadd.f32 %v500_v32, %v316_v30  ;;  %v333_v43 = vadd.f32 %v500_v32, %v318_v33  ;;  %v334_v44 = vadd.f32 %v500_v32, %v319_v34 }
  0x18   : > { %v335_v55 = vadd.f32 %v500_v32, %v320_v45  ;;  %v336_v56 = vadd.f32 %v500_v32, %v321_v46  ;;  %v338_v4 = vadd.f32 %v500_v32, %v323_v60 }
  0x78   : > { %v346_v5 = vpop.permute.xlu0 %345 }
  0x79   : > { %v349_v6 = vmul.f32 %v524_v2, %v346_v5  ;;  %v348_v7 = vmul.f32 %v523_v3, %v346_v5  ;;  %v350_v11 = vmul.f32 %v527_v8, %v346_v5  ;;  %v351_v12 = vmul.f32 %v528_v9, %v346_v5 }
  0x7a   : > { %v352_v16 = vmul.f32 %v531_v13, %v346_v5  ;;  %v353_v17 = vmul.f32 %v532_v14, %v346_v5  ;;  %v354_v20 = vmul.f32 %v535_v18, %v346_v5  ;;  %v355_v21 = vmul.f32 %v536_v19, %v346_v5 }
  0x7b   : > { %366 = vrot.lane.b32.xlu1 %v349_v6, %s562_s7  ;;  %364 = vrot.lane.b32.xlu0 %v348_v7, %s562_s7  ;;  %v337_v3 = vadd.f32 %v500_v32, %v322_v59 }
  0x7f   : > { %368 = vrot.lane.b32.xlu1 %v350_v11, %s562_s7  ;;  %370 = vrot.lane.b32.xlu0 %v351_v12, %s562_s7 }
  0x83   : > { %372 = vrot.lane.b32.xlu1 %v352_v16, %s562_s7  ;;  %374 = vrot.lane.b32.xlu0 %v353_v17, %s562_s7 }
  0x87   : > { %376 = vrot.lane.b32.xlu1 %v354_v20, %s562_s7  ;;  %378 = vrot.lane.b32.xlu0 %v355_v21, %s562_s7 }
  0xed   : > { %v367_v41 = vpop.permute.xlu1 %366  ;;  %v365_v42 = vpop.permute.xlu0 %364 }
  0xee   : > { %v389_v47 = vadd.f32 %v367_v41, %v332_v37  ;;  %v388_v48 = vadd.f32 %v365_v42, %v331_v38 }
  0xf0   : > { %v404_v51 = vadd.f32 %v502_v40, %v389_v47  ;;  %v403_v52 = vadd.f32 %v502_v40, %v388_v48 }
  0xf1   : > { %v369_v53 = vpop.permute.xlu1 %368  ;;  %v371_v54 = vpop.permute.xlu0 %370 }
  0xf2   : > { %413 = vst.msk [vmem:[%s635_s20 + $0x8] sm:$0xff] %vm411_vm0, %v404_v51  ;;  %412 = vst.msk [vmem:[%s635_s20] sm:$0xff] %vm411_vm0, %v403_v52  ;;  %v390_v57 = vadd.f32 %v369_v53, %v333_v43  ;;  %v391_v58 = vadd.f32 %v371_v54, %v334_v44 }
  0xf4   : > { %v405_v61 = vadd.f32 %v502_v40, %v390_v57  ;;  %v406_v62 = vadd.f32 %v502_v40, %v391_v58 }
  0xf5   : > { %v373_v63 = vpop.permute.xlu1 %372  ;;  %v375_v0 = vpop.permute.xlu0 %374 }
  0xf6   : > { %414 = vst.msk [vmem:[%s635_s20 + $0x10] sm:$0xff] %vm411_vm0, %v405_v61  ;;  %415 = vst.msk [vmem:[%s635_s20 + $0x18] sm:$0xff] %vm411_vm0, %v406_v62  ;;  %v392_v1 = vadd.f32 %v373_v63, %v335_v55  ;;  %v393_v2 = vadd.f32 %v375_v0, %v336_v56 }
  0xf8   : > { %v407_v5 = vadd.f32 %v502_v40, %v392_v1  ;;  %v408_v6 = vadd.f32 %v502_v40, %v393_v2 }
  0xf9   : > { %v377_v7 = vpop.permute.xlu1 %376  ;;  %v379_v8 = vpop.permute.xlu0 %378 }
  0xfa   : > { %416 = vst.msk [vmem:[%s635_s20 + $0x20] sm:$0xff] %vm411_vm0, %v407_v5  ;;  %417 = vst.msk [vmem:[%s635_s20 + $0x28] sm:$0xff] %vm411_vm0, %v408_v6  ;;  %v394_v9 = vadd.f32 %v377_v7, %v337_v3  ;;  %v395_v10 = vadd.f32 %v379_v8, %v338_v4 }
  0xfc   : > { %v409_v11 = vadd.f32 %v502_v40, %v394_v9  ;;  %v410_v12 = vadd.f32 %v502_v40, %v395_v10 }
  0xfe   : > { %418 = vst.msk [vmem:[%s635_s20 + $0x30] sm:$0xff] %vm411_vm0, %v409_v11  ;;  %419 = vst.msk [vmem:[%s635_s20 + $0x38] sm:$0xff] %vm411_vm0, %v410_v12 }
  0xff PF: > { %s16_s21 = sadd.s32 1, %s559_s21  }
 0x100   : > { %p13_p4 = scmp.ge.s32.totalorder %s16_s21, 4  }
 0x102   :  { %15 = sbr.rel (!%p13_p4) target bundleno = 1 (0x1), region = 77 }

// kernel: basic_block_forward.3
= control target key start
LH: loop header
LB: loop body
LE: loop exit
PB: predicated region body
PF: predicated region fallthrough
CT: control target
= control target key end

     0   :  { %s608_s12 = smov 0   ;;  %s675_s0 = inlined_call_operand.vmem [shape: bf16[2,64,36], index: 0, kind: input, shape index: {}]   ;;  %s676_s1 = inlined_call_operand.vmem [shape: bf16[36,16], index: 1, kind: input, shape index: {}]   ;;  %s677_s2 = inlined_call_operand.vmem [shape: bf16[2,64,16], index: 2, kind: output, shape index: {0}]   ;;  %s678_s3 = inlined_call_operand.vmem [shape: f32[2,2,16], index: 3, kind: output, shape index: {1}]  }
   0x1 LB: > { %s495_s13 = sadd.s32 4294967295, %s586_s12   ;;  %p499_p0 = scmp.ge.s32.totalorder %s586_s12, 1  ;;  %s586_s12 = sphi %s608_s12, %s14_s12  }
   0x2   : > { %p140_p1 = scmp.lt.s32.totalorder %s586_s12, 3 }
   0x4   : > { %p141_p2 = pnand %p499_p0, %p140_p1 }
   0x5   : > { %v573_v0 = vld [vmem:[%s676_s1] sm:$0xff] (!%p141_p2)   ;;  %v574_v1 = vld [vmem:[%s676_s1 + $0x8] sm:$0xff] (!%p141_p2)   ;;  %p168_p3 = scmp.lt.s32.totalorder (!%p141_p2), %s495_s13, 1  ;;  %v575_v2 = vld [vmem:[%s676_s1 + $0x10] ss:$0 sps:$4 sm:$0x33] (!%p141_p2)  }
   0x6   : > { %144 = sbr.rel (%p141_p2) target bundleno = 264 (0x108), region = 28  ;;  %543 = vmatprep.subr.bf16.mxu0 (!%p141_p2), %v573_v0  ;;  %557 = vmatprep.subr.bf16.mxu1 (!%p141_p2), %v573_v0  ;;  %vm244_vm0 = vcmask (!%p141_p2), 1041408   ;;  %vm231_vm1 = vcmask (!%p141_p2), 293888   ;;  %vm400_vm2 = vcmask (!%p141_p2), 125952   ;;  %vm313_vm3 = vcmask (!%p141_p2), 130048  }
   0x7   : > { %544 = vmatpush3.bf16.msra.mxu0 (!%p141_p2), %v573_v0  ;;  %560 = vmatpush3.bf16.msra.mxu1 (!%p141_p2), %v573_v0  ;;  %v246_v4 = vsel (!%p141_p2), %vm244_vm0, %v575_v2, 0  ;;  %vm364_vm4 = vcmask (!%p141_p2), 1040384   ;;  %vm366_vm5 = vcmask (!%p141_p2), 123904  }
   0x8   : > { %545 = vmatprep.subr.bf16.mxu0 (!%p141_p2), %v574_v1  ;;  %558 = vmatprep.subr.bf16.mxu1 (!%p141_p2), %v574_v1 }
   0xb   : > { %546 = vmatpush3.bf16.msra.mxu0 (!%p141_p2), %v574_v1  ;;  %561 = vmatpush3.bf16.msra.mxu1 (!%p141_p2), %v574_v1 }
   0xc   : > { %563 = vmatprep.subr.msk.bf16.mxu0 (!%p141_p2), %vm244_vm0, %v575_v2  ;;  %564 = vmatprep.subr.msk.bf16.mxu1 (!%p141_p2), %vm244_vm0, %v575_v2 }
   0xd   : > { %s680_s13 = smov (!%p168_p3, %s495_s13), 1 }
   0xe   : > { %s526_s20 = sshll.u32 %s680_s13, 5  ;;  %s504_s27 = sshll.u32 %s680_s13, 1 }
   0xf   : > { %s172_s23 = scalar_lea.vmem %s675_s0, %s526_s20  ;;  %548 = vmatpush3.bf16.msra.mxu0 %v246_v4  ;;  %562 = vmatpush3.bf16.msra.mxu1 %v246_v4  ;;  %s634_s26 = scalar_lea.vmem %s677_s2, %s526_s20 }
  0x10   : > { %v576_v3 = vld [vmem:[%s172_s23] sm:$0xff]   ;;  %v577_v5 = vld [vmem:[%s172_s23 + $0x8] sm:$0xff]   ;;  %v578_v6 = vld [vmem:[%s172_s23 + $0x10] sm:$0xff]   ;;  %s181_s30 = scalar_lea.vmem %s678_s3, %s504_s27 }
  0x11   : > { %549 = vmatprep.mubr.msk.bf16.mxu0 %vm231_vm1, %v576_v3  ;;  %v579_v7 = vld [vmem:[%s172_s23 + $0x18] sm:$0xff]   ;;  %553 = vmatprep.mubr.msk.bf16.mxu1 %vm231_vm1, %v578_v6 }
  0x12   : > { %550 = vmatmul.mubr.msk.bf16.vlgmr.msra.gmra.mrb[0].mxu0 %vm231_vm1, %v577_v5  ;;  %554 = vmatmul.mubr.msk.bf16.vlgmr.msra.gmra.mrb[0].mxu1 %vm231_vm1, %v579_v7 }
  0xe5   : > { %v551_v8 = vpop.f32.mrb[0].mxu0  ;;  %v555_v9 = vpop.f32.mrb[0].mxu1 }
  0xe6   : > { %v530_v10 = vpack.c.bf16 %v551_v8, %v551_v8  ;;  %v282_v11 = vpop.f32.mrb[1].mxu0  ;;  %v298_v12 = vpop.f32.mrb[1].mxu1  ;;  %v337_v17 = vmul.f32 %v551_v8, %v551_v8  ;;  %v317_v25 = vsel %vm313_vm3, %v551_v8, 0.0  ;;  %v534_v28 = vpack.c.bf16 %v555_v9, %v555_v9 }
  0xe7   : > { %v335_v13 = vmul.f32 %v282_v11, %v282_v11  ;;  %v528_v14 = vpack.c.bf16 %v282_v11, %v282_v11  ;;  %v552_v15 = vpop.f32.mrb[2].mxu0  ;;  %v556_v16 = vpop.f32.mrb[2].mxu1  ;;  %v314_v21 = vsel %vm313_vm3, %v282_v11, 0.0  ;;  %v339_v31 = vmul.f32 %v298_v12, %v298_v12 }
  0xe8   : > { %403 = vst.msk [vmem:[%s634_s26 + $0x8] sm:$0xf] %vm400_vm2, %v530_v10  ;;  %v531_v18 = vpack.c.bf16 %v552_v15, %v552_v15  ;;  %v285_v19 = vpop.f32.mrb[3].mxu0  ;;  %v301_v20 = vpop.f32.mrb[3].mxu1  ;;  %v338_v26 = vmul.f32 %v552_v15, %v552_v15  ;;  %v532_v32 = vpack.c.bf16 %v298_v12, %v298_v12  ;;  %407 = vst.msk [vmem:[%s634_s26 + $0x18] sm:$0xf] %vm400_vm2, %v534_v28 }
  0xe9   : > { %401 = vst.msk [vmem:[%s634_s26] sm:$0xf] %vm400_vm2, %v528_v14  ;;  %v315_v22 = vsel %vm313_vm3, %v285_v19, 0.0  ;;  %v336_v23 = vmul.f32 %v285_v19, %v285_v19  ;;  %v529_v24 = vpack.c.bf16 %v285_v19, %v285_v19  ;;  %v343_v29 = vsel %vm313_vm3, %v335_v13, 0.0 }
  0xea   : > { %404 = vst.msk [vmem:[%s634_s26 + $0xc] sm:$0xf] %vm400_vm2, %v531_v18  ;;  %v316_v27 = vadd.f32 %v315_v22, %v314_v21  ;;  %v346_v35 = vsel %vm313_vm3, %v337_v17, 0.0  ;;  %v319_v36 = vsel %vm313_vm3, %v552_v15, 0.0  ;;  %v321_v37 = vsel %vm313_vm3, %v298_v12, 0.0 }
  0xeb   : > { %v344_v30 = vsel %vm313_vm3, %v336_v23, 0.0  ;;  %402 = vst.msk [vmem:[%s634_s26 + $0x4] sm:$0xf] %vm400_vm2, %v529_v24  ;;  %405 = vst.msk [vmem:[%s634_s26 + $0x10] sm:$0xf] %vm400_vm2, %v532_v32  ;;  %v535_v38 = vpack.c.bf16 %v556_v16, %v556_v16  ;;  %v533_v41 = vpack.c.bf16 %v301_v20, %v301_v20  ;;  %v348_v42 = vsel %vm313_vm3, %v338_v26, 0.0 }
  0xec   : > { %v318_v33 = vadd.f32 %v317_v25, %v316_v27  ;;  %v345_v34 = vadd.f32 %v344_v30, %v343_v29  ;;  %v350_v43 = vsel %vm313_vm3, %v339_v31, 0.0  ;;  %v340_v44 = vmul.f32 %v301_v20, %v301_v20 }
  0xed   : > { %408 = vst.msk [vmem:[%s634_s26 + $0x1c] sm:$0xf] %vm400_vm2, %v535_v38  ;;  %406 = vst.msk [vmem:[%s634_s26 + $0x14] sm:$0xf] %vm400_vm2, %v533_v41  ;;  %v341_v47 = vmul.f32 %v555_v9, %v555_v9  ;;  %v323_v48 = vsel %vm313_vm3, %v301_v20, 0.0  ;;  %v325_v51 = vsel %vm313_vm3, %v555_v9, 0.0  ;;  %v342_v52 = vmul.f32 %v556_v16, %v556_v16 }
  0xee   : > { %v347_v39 = vadd.f32 %v346_v35, %v345_v34  ;;  %v320_v40 = vadd.f32 %v319_v36, %v318_v33  ;;  %v352_v53 = vsel %vm313_vm3, %v340_v44, 0.0  ;;  %v327_v57 = vsel %vm313_vm3, %v556_v16, 0.0 }
  0xef   : > { %v354_v56 = vsel %vm313_vm3, %v341_v47, 0.0  ;;  %v356_v60 = vsel %vm313_vm3, %v342_v52, 0.0 }
  0xf0   : > { %v322_v45 = vadd.f32 %v321_v37, %v320_v40  ;;  %v349_v46 = vadd.f32 %v348_v42, %v347_v39 }
  0xf2   : > { %v351_v49 = vadd.f32 %v350_v43, %v349_v46  ;;  %v324_v50 = vadd.f32 %v323_v48, %v322_v45 }
  0xf4   : > { %v326_v54 = vadd.f32 %v325_v51, %v324_v50  ;;  %v353_v55 = vadd.f32 %v352_v53, %v351_v49 }
  0xf6   : > { %v328_v58 = vadd.f32 %v327_v57, %v326_v54  ;;  %v355_v59 = vadd.f32 %v354_v56, %v353_v55 }
  0xf8   : > { %v329_v61 = vrot.slane %v328_v58, 4  ;;  %v357_v62 = vadd.f32 %v356_v60, %v355_v59 }
  0xfa   : > { %v330_v63 = vadd.f32 %v329_v61, %v328_v58  ;;  %v358_v0 = vrot.slane %v357_v62, 4 }
  0xfc   : > { %v331_v1 = vrot.slane %v330_v63, 2  ;;  %v359_v2 = vadd.f32 %v358_v0, %v357_v62 }
  0xfe   : > { %v332_v3 = vadd.f32 %v331_v1, %v330_v63  ;;  %v360_v4 = vrot.slane %v359_v2, 2 }
 0x100   : > { %v333_v5 = vrot.slane %v332_v3, 1  ;;  %v361_v6 = vadd.f32 %v360_v4, %v359_v2 }
 0x102   : > { %v362_v7 = vrot.slane %v361_v6, 1  ;;  %v334_v8 = vadd.f32 %v333_v5, %v332_v3 }
 0x104   : > { %v363_v9 = vadd.f32 %v362_v7, %v361_v6 }
 0x106   : > { %v365_v10 = vsel %vm364_vm4, %v334_v8, %v363_v9 }
 0x107   : > { %367 = vst.msk [vmem:[%s181_s30] sm:$0x3] %vm366_vm5, %v365_v10 }
 0x108 PF: > { %s14_s12 = sadd.s32 1, %s586_s12  }
 0x109   : > { %p11_p4 = scmp.ge.s32.totalorder %s14_s12, 4  }
 0x10b   :  { %13 = sbr.rel (!%p11_p4) target bundleno = 1 (0x1), region = 70 }

// kernel: basic_block_forward.4
= control target key start
LH: loop header
LB: loop body
LE: loop exit
PB: predicated region body
PF: predicated region fallthrough
CT: control target
= control target key end

     0   :  { %s1746_s21 = smov 0   ;;  %s2245_s0 = inlined_call_operand.vmem [shape: bf16[2,64,16], index: 0, kind: input, shape index: {}]   ;;  %s2246_s1 = inlined_call_operand.vmem [shape: f32[1,8], index: 1, kind: input, shape index: {}]   ;;  %s2247_s2 = inlined_call_operand.vmem [shape: f32[1,8], index: 2, kind: input, shape index: {}]   ;;  %s2248_s3 = inlined_call_operand.vmem [shape: bf16[72,8], index: 3, kind: input, shape index: {}]   ;;  %s2249_s4 = inlined_call_operand.vmem [shape: f32[64,9], index: 4, kind: input, shape index: {}]   ;;  %s2250_s5 = inlined_call_operand.vmem [shape: bf16[2,64,8], index: 5, kind: output, shape index: {0}]   ;;  %s2251_s6 = inlined_call_operand.vmem [shape: f32[2,2,8], index: 6, kind: output, shape index: {1}]  }
   0x1 LB: > { %s1373_s22 = sadd.s32 4294967295, %s1693_s21   ;;  %p1377_p0 = scmp.ge.s32.totalorder %s1693_s21, 1  ;;  %s1693_s21 = sphi %s1746_s21, %s17_s21  }
   0x2   : > { %p215_p1 = scmp.lt.s32.totalorder %s1693_s21, 3 }
   0x4   : > { %p216_p2 = pnand %p1377_p0, %p215_p1 }
   0x5   : > { %v329_v0 = vld [vmem:[%s2249_s4 + $0x10] sm:$0xff] (!%p216_p2)  ;;  %v327_v1 = vld [vmem:[%s2249_s4] sm:$0xff] (!%p216_p2)  ;;  %v330_v2 = vld [vmem:[%s2249_s4 + $0x18] sm:$0xff] (!%p216_p2)  ;;  %v1695_v3 = vmov (!%p216_p2), 1   ;;  %v1696_v6 = vmov (!%p216_p2), 0   ;;  %p249_p3 = scmp.lt.s32.totalorder (!%p216_p2), %s1373_s22, 1 }
   0x6   : > { %219 = sbr.rel (%p216_p2) target bundleno = 645 (0x285), region = 40  ;;  %1497 = vset.pattern.permute.xlu1 (!%p216_p2), %v1695_v3  ;;  %1496 = vset.pattern.permute.xlu0 (!%p216_p2), %v1695_v3  ;;  %vm345_vm0 = vcmp.ne.f32.partialorder (!%p216_p2), %v329_v0, 0.0  ;;  %vm343_vm1 = vcmp.ne.f32.partialorder (!%p216_p2), %v327_v1, 0.0  ;;  %vm346_vm2 = vcmp.ne.f32.partialorder (!%p216_p2), %v330_v2, 0.0  ;;  %v328_v4 = vld [vmem:[%s2249_s4 + $0x8] sm:$0xff] (!%p216_p2)  ;;  %v333_v5 = vld [vmem:[%s2249_s4 + $0x30] sm:$0xff] (!%p216_p2) }
   0x7   : > { %v1772_v7 = vsel (!%p216_p2), %vm345_vm0, 1, %v1696_v6  ;;  %v1775_v8 = vsel (!%p216_p2), %vm343_vm1, 1, %v1696_v6  ;;  %vm344_vm3 = vcmp.ne.f32.partialorder (!%p216_p2), %v328_v4, 0.0  ;;  %v1780_v9 = vsel (!%p216_p2), %vm346_vm2, 1, %v1696_v6  ;;  %v1796_v12 = vld [vmem:[%s2246_s1] ss:$0 sm:$0xff] (!%p216_p2) }
   0x8   : > { %414 = vperm.xlu1 (!%p216_p2), %1497, %v1772_v7   ;;  %408 = vperm.xlu0 (!%p216_p2), %1496, %v1775_v8   ;;  %v1783_v10 = vsel (!%p216_p2), %vm344_vm3, 1, %v1696_v6  ;;  %vm349_vm4 = vcmp.ne.f32.partialorder (!%p216_p2), %v333_v5, 0.0  ;;  %v1697_v19 = vmov (!%p216_p2), 2   ;;  %v1812_v20 = vld [vmem:[%s2247_s2] ss:$0 sm:$0xff] (!%p216_p2)  ;;  %v332_v30 = vld [vmem:[%s2249_s4 + $0x28] sm:$0xff] (!%p216_p2) }
   0x9   : > { %v1790_v11 = vsel (!%p216_p2), %vm349_vm4, 1, %v1696_v6  ;;  %vm318_vm5 = vcmask (!%p216_p2), 64512   ;;  %vm348_vm6 = vcmp.ne.f32.partialorder (!%p216_p2), %v332_v30, 0.0  ;;  %v1698_v38 = vmov (!%p216_p2), 3   ;;  %v331_v41 = vld [vmem:[%s2249_s4 + $0x20] sm:$0xff] (!%p216_p2)  ;;  %v334_v43 = vld [vmem:[%s2249_s4 + $0x38] sm:$0xff] (!%p216_p2) }
   0xa   : > { %v1840_v40 = vsel (!%p216_p2), %vm348_vm6, 1, %v1696_v6  ;;  %vm347_vm7 = vcmp.ne.f32.partialorder (!%p216_p2), %v331_v41, 0.0  ;;  %vm350_vm8 = vcmp.ne.f32.partialorder (!%p216_p2), %v334_v43, 0.0  ;;  %v1699_v48 = vmov (!%p216_p2), 5   ;;  %v399_v0 = vld [vmem:[#allocation2 + $0x8] sm:$0xff] (!%p216_p2)  ;;  %s1703_s25 = smov (!%p216_p2), 8  }
   0xb   : > { %v1856_v45 = vsel (!%p216_p2), %vm347_vm7, 1, %v1696_v6  ;;  %v1863_v49 = vsel (!%p216_p2), %vm350_vm8, 1, %v1696_v6  ;;  %v1700_v53 = vmov (!%p216_p2), 6   ;;  %v1701_v60 = vmov (!%p216_p2), 7   ;;  %s1704_s26 = smov (!%p216_p2), 16   ;;  %s1705_s27 = smov (!%p216_p2), 24  }
   0xc   : > { %417 = vperm.xlu1 (!%p216_p2), %1497, %v1780_v9   ;;  %411 = vperm.xlu0 (!%p216_p2), %1496, %v1783_v10   ;;  %v1702_v61 = vmov (!%p216_p2), 8   ;;  %s1706_s28 = smov (!%p216_p2), 32   ;;  %s1707_s29 = smov (!%p216_p2), 40  }
   0xd   : > { %s2253_s22 = smov (!%p249_p3, %s1373_s22), 1  ;;  %s1708_s30 = smov 48  }
   0xe   : > { %s1404_s9 = sshll.u32 %s2253_s22, 5  ;;  %s1709_s16 = smov 56  }
   0xf   : > { %s1803_s14 = scalar_lea.vmem %s2245_s0, %s1404_s9  ;;  %s1710_s19 = smov 64  }
  0x10   : > { %v1415_v13 = vld [vmem:[%s1803_s14] sm:$0xff]   ;;  %v1430_v14 = vld [vmem:[%s1803_s14 + $0x8] sm:$0xff]   ;;  %1498 = vset.pattern.permute.xlu1 %v1697_v19  ;;  %426 = vperm.xlu0 %1496, %v1790_v11   ;;  %v1431_v25 = vld [vmem:[%s1803_s14 + $0x10] sm:$0xff]   ;;  %s2204_s24 = scalar_lea.vmem %s2250_s5, %s1404_s9  ;;  %s1382_s9 = sshll.u32 %s2253_s22, 1 }
  0x11   : > { %v1417_v15 = vunpack.c.h.bf16 %v1415_v13  ;;  %v1420_v16 = vunpack.c.l.bf16 %v1430_v14  ;;  %v1416_v17 = vunpack.c.l.bf16 %v1415_v13  ;;  %v1421_v18 = vunpack.c.h.bf16 %v1430_v14  ;;  %459 = vperm.xlu1 %1498, %v1783_v10   ;;  %v1432_v50 = vld [vmem:[%s1803_s14 + $0x18] sm:$0xff]  }
  0x12   : > { %v1425_v29 = vunpack.c.h.bf16 %v1431_v25  ;;  %v1424_v42 = vunpack.c.l.bf16 %v1431_v25  ;;  %v1428_v51 = vunpack.c.l.bf16 %v1432_v50  ;;  %v1429_v52 = vunpack.c.h.bf16 %v1432_v50 }
  0x13   : > { %v288_v21 = vmul.f32 %v1417_v15, %v1796_v12  ;;  %v289_v22 = vmul.f32 %v1420_v16, %v1796_v12  ;;  %v287_v23 = vmul.f32 %v1416_v17, %v1796_v12  ;;  %v290_v24 = vmul.f32 %v1421_v18, %v1796_v12 }
  0x14   : > { %1506 = vset.pattern.permute.xlu0 %v1697_v19  ;;  %v292_v35 = vmul.f32 %v1425_v29, %v1796_v12  ;;  %v291_v44 = vmul.f32 %v1424_v42, %v1796_v12  ;;  %v293_v54 = vmul.f32 %v1428_v51, %v1796_v12  ;;  %v294_v55 = vmul.f32 %v1429_v52, %v1796_v12 }
  0x15   : > { %v303_v26 = vadd.f32 %v1812_v20, %v288_v21  ;;  %v304_v27 = vadd.f32 %v1812_v20, %v289_v22  ;;  %v302_v28 = vadd.f32 %v1812_v20, %v287_v23  ;;  %v305_v31 = vadd.f32 %v1812_v20, %v290_v24  ;;  %462 = vperm.xlu1 %1498, %v1772_v7  }
  0x16   : > { %456 = vperm.xlu0 %1506, %v1775_v8   ;;  %v307_v37 = vadd.f32 %v1812_v20, %v292_v35  ;;  %v306_v46 = vadd.f32 %v1812_v20, %v291_v44  ;;  %v308_v56 = vadd.f32 %v1812_v20, %v293_v54  ;;  %v309_v57 = vadd.f32 %v1812_v20, %v294_v55 }
  0x17   : > { %v311_v32 = vmax.f32 %v303_v26, 0.0  ;;  %v312_v33 = vmax.f32 %v304_v27, 0.0  ;;  %v310_v34 = vmax.f32 %v302_v28, 0.0  ;;  %v313_v36 = vmax.f32 %v305_v31, 0.0 }
  0x18   : > { %v315_v39 = vmax.f32 %v307_v37, 0.0  ;;  %v314_v47 = vmax.f32 %v306_v46, 0.0  ;;  %v316_v58 = vmax.f32 %v308_v56, 0.0  ;;  %v317_v59 = vmax.f32 %v309_v57, 0.0 }
  0x19   : > { %320 = vst.msk [vmem:[#allocation2 + $0x18] sm:$0xff] %vm318_vm5, %v311_v32  ;;  %321 = vst.msk [vmem:[#allocation2 + $0x20] sm:$0xff] %vm318_vm5, %v312_v33  ;;  %1499 = vset.pattern.permute.xlu1 %v1698_v38 }
  0x1a   : > { %319 = vst.msk [vmem:[#allocation2 + $0x10] sm:$0xff] %vm318_vm5, %v310_v34  ;;  %322 = vst.msk [vmem:[#allocation2 + $0x28] sm:$0xff] %vm318_vm5, %v313_v36  ;;  %465 = vperm.xlu0 %1506, %v1780_v9   ;;  %504 = vperm.xlu1 %1499, %v1775_v8  }
  0x1b   : > { %324 = vst.msk [vmem:[#allocation2 + $0x38] sm:$0xff] %vm318_vm5, %v315_v39  ;;  %323 = vst.msk [vmem:[#allocation2 + $0x30] sm:$0xff] %vm318_vm5, %v314_v47 }
  0x1c   : > { %325 = vst.msk [vmem:[#allocation2 + $0x40] sm:$0xff] %vm318_vm5, %v316_v58  ;;  %326 = vst.msk [vmem:[#allocation2 + $0x48] sm:$0xff] %vm318_vm5, %v317_v59 }
  0x1e   : > { %471 = vperm.xlu0 %1506, %v1840_v40   ;;  %510 = vperm.xlu1 %1499, %v1772_v7  }
  0x20   : > { %v1947_v31 = vld [vmem:[#allocation2 + $0x18] sm:$0xff] }
  0x21   : > { %v400_v1 = vld [vmem:[#allocation2 + $0x10] sm:$0xff]  ;;  %v1964_v37 = vld [vmem:[#allocation2 + $0x19] sm:$0xff]  ;;  %v1974_v47 = vld [vmem:[#allocation2 + $0x27] sm:$0xff] }
  0x22   : > { %1509 = vset.pattern.permute.xlu0 %v1698_v38  ;;  %513 = vperm.xlu1 %1499, %v1780_v9   ;;  %v448_v14 = vld [vmem:[#allocation2 + $0x11] sm:$0xff]  ;;  %v447_v15 = vld [vmem:[#allocation2 + $0x9] sm:$0xff]  ;;  %v1978_v50 = vld [vmem:[#allocation2 + $0x1f] sm:$0xff] }
  0x23   : > { %507 = vperm.xlu0 %1509, %v1783_v10   ;;  %v1939_v25 = vld [vmem:[#allocation2 + $0xf] sm:$0xff]  ;;  %v1942_v26 = vld [vmem:[#allocation2 + $0x17] sm:$0xff] }
  0x24   : > { %v1985_v55 = vld [vmem:[#allocation2 + $0x28] sm:$0xff] }
  0x25   : > { %v1987_v58 = vld [vmem:[#allocation2 + $0x29] sm:$0xff] }
  0x26   : > { %1500 = vset.pattern.permute.xlu1 %v1699_v48 }
  0x27   : > { %516 = vperm.xlu0 %1509, %v1856_v45   ;;  %563 = vperm.xlu1 %1500, %v1783_v10  }
  0x2b   : > { %525 = vperm.xlu0 %1509, %v1863_v49   ;;  %566 = vperm.xlu1 %1500, %v1772_v7  }
  0x2f   : > { %1511 = vset.pattern.permute.xlu0 %v1699_v48  ;;  %1501 = vset.pattern.permute.xlu1 %v1700_v53 }
  0x30   : > { %560 = vperm.xlu0 %1511, %v1775_v8   ;;  %608 = vperm.xlu1 %1501, %v1775_v8  }
  0x34   : > { %569 = vperm.xlu0 %1511, %v1780_v9   ;;  %614 = vperm.xlu1 %1501, %v1772_v7  }
  0x38   : > { %575 = vperm.xlu0 %1511, %v1840_v40   ;;  %617 = vperm.xlu1 %1501, %v1780_v9  }
  0x3c   : > { %1513 = vset.pattern.permute.xlu0 %v1700_v53  ;;  %1502 = vset.pattern.permute.xlu1 %v1701_v60 }
  0x3d   : > { %611 = vperm.xlu0 %1513, %v1783_v10   ;;  %659 = vperm.xlu1 %1502, %v1783_v10  }
  0x41   : > { %620 = vperm.xlu0 %1513, %v1856_v45   ;;  %662 = vperm.xlu1 %1502, %v1772_v7  }
  0x45   : > { %629 = vperm.xlu0 %1513, %v1863_v49   ;;  %1503 = vset.pattern.permute.xlu1 %v1702_v61 }
  0x46   : > { %704 = vperm.xlu1 %1503, %v1775_v8  }
  0x49   : > { %1515 = vset.pattern.permute.xlu0 %v1701_v60 }
  0x4a   : > { %656 = vperm.xlu0 %1515, %v1775_v8   ;;  %1504 = vset.pattern.permute.xlu1 %v1695_v3 }
  0x4b   : > { %420 = vperm.xlu1 %1504, %v1856_v45  }
  0x4e   : > { %665 = vperm.xlu0 %1515, %v1780_v9  }
  0x4f   : > { %423 = vperm.xlu1 %1504, %v1840_v40  }
  0x52   : > { %671 = vperm.xlu0 %1515, %v1840_v40  }
  0x53   : > { %1505 = vset.pattern.permute.xlu1 %v1702_v61 }
  0x54   : > { %713 = vperm.xlu1 %1505, %v1780_v9  }
  0x56   : > { %1517 = vset.pattern.permute.xlu0 %v1702_v61 }
  0x57   : > { %707 = vperm.xlu0 %1517, %v1783_v10  }
  0x58   : > { %1507 = vset.pattern.permute.xlu1 %v1695_v3 }
  0x59   : > { %429 = vperm.xlu1 %1507, %v1863_v49  }
  0x5b   : > { %710 = vperm.xlu0 %1517, %v1772_v7  }
  0x5d   : > { %1508 = vset.pattern.permute.xlu1 %v1697_v19 }
  0x5e   : > { %468 = vperm.xlu1 %1508, %v1856_v45  }
  0x5f   : > { %716 = vperm.xlu0 %1517, %v1856_v45  }
  0x62   : > { %474 = vperm.xlu1 %1508, %v1790_v11  }
  0x63   : > { %725 = vperm.xlu0 %1517, %v1863_v49  }
  0x66   : > { %477 = vperm.xlu1 %1508, %v1863_v49  }
  0x67   : > { %1520 = vset.pattern.permute.xlu0 %v1696_v6 }
  0x68   : > { %363 = vperm.xlu0 %1520, %v1783_v10  }
  0x6a   : > { %1510 = vset.pattern.permute.xlu1 %v1698_v38  ;;  %v1966_v38 = vld [vmem:[#allocation2 + $0x21] sm:$0xff] }
  0x6b   : > { %519 = vperm.xlu1 %1510, %v1840_v40  }
  0x6c   : > { %372 = vperm.xlu0 %1520, %v1856_v45  }
  0x6f   : > { %522 = vperm.xlu1 %1510, %v1790_v11  }
  0x70   : > { %378 = vperm.xlu0 %1520, %v1790_v11  }
  0x73   : > { %1512 = vset.pattern.permute.xlu1 %v1699_v48 }
  0x74   : > { %1681 = vset.pattern.permute.xlu0 %v1702_v61  ;;  %572 = vperm.xlu1 %1512, %v1856_v45  }
  0x78   : > { %578 = vperm.xlu1 %1512, %v1790_v11  }
  0x7c   : > { %581 = vperm.xlu1 %1512, %v1863_v49  }
  0x80   : > { %1514 = vset.pattern.permute.xlu1 %v1700_v53 }
  0x81   : > { %623 = vperm.xlu1 %1514, %v1840_v40  }
  0x85   : > { %626 = vperm.xlu1 %1514, %v1790_v11  }
  0x87   : > { %v1922_v62 = vpop.permute.xlu1 %414  ;;  %v409_v63 = vpop.permute.xlu0 %408 }
  0x88   : > { %vm431_vm9 = vcmp.eq.s32.totalorder %v409_v63, 1  ;;  %vm433_vm1 = vcmp.eq.s32.totalorder %v1922_v62, 1 }
  0x89   : > { %1516 = vset.pattern.permute.xlu1 %v1701_v60  ;;  %v439_v2 = vsel %vm431_vm9, %v399_v0, 0.0 }
  0x8a   : > { %668 = vperm.xlu1 %1516, %v1856_v45  }
  0x8b   : > { %v418_v3 = vpop.permute.xlu1 %417  ;;  %v412_v4 = vpop.permute.xlu0 %411 }
  0x8c   : > { %vm432_vm10 = vcmp.eq.s32.totalorder %v412_v4, 1  ;;  %vm434_vm15 = vcmp.eq.s32.totalorder %v418_v3, 1  ;;  %v1682_v4 = vld [vmem:[%s2248_s3] sm:$0xff]  }
  0x8d   : > { %v440_v5 = vsel %vm432_vm10, %v400_v1, 0.0  ;;  %1442 = vmatprep.subr.bf16.mxu0 %v1682_v4  ;;  %1460 = vmatprep.subr.bf16.mxu1 %v1682_v4 }
  0x8e   : > { %v1521_v10 = vpack.i.bf16 %v440_v5, %v439_v2  ;;  %674 = vperm.xlu1 %1516, %v1790_v11   ;;  %v1998_v2 = vld [vmem:[#allocation2 + $0x2f] sm:$0xff]  ;;  %1443 = vmatpush3.bf16.msra.mxu0 %v1682_v4 }
  0x8f   : > { %v1926_v12 = vpop.permute.xlu0 %426  ;;  %1465 = vmatpush3.bf16.msra.mxu1 %v1682_v4 }
  0x90   : > { %v460_v13 = vpop.permute.xlu1 %459  ;;  %1522 = vrot.lane.b32.xlu0 %v1521_v10, %s1703_s25 }
  0x91   : > { %vm480_vm11 = vcmp.eq.s32.totalorder %v460_v13, 1 }
  0x92   : > { %677 = vperm.xlu1 %1516, %v1863_v49   ;;  %v488_v18 = vsel %vm480_vm11, %v448_v14, 0.0 }
  0x94   : > { %v1930_v16 = vpop.permute.xlu1 %462 }
  0x95   : > { %v457_v17 = vpop.permute.xlu0 %456  ;;  %vm481_vm4 = vcmp.eq.s32.totalorder %v1930_v16, 1 }
  0x96   : > { %vm479_vm12 = vcmp.eq.s32.totalorder %v457_v17, 1  ;;  %1518 = vset.pattern.permute.xlu1 %v1702_v61  ;;  %v489_v48 = vsel %vm481_vm4, %v1964_v37, 0.0  ;;  %vm1123_vm4 = vcmask 1043456  }
  0x97   : > { %v487_v19 = vsel %vm479_vm12, %v447_v15, 0.0  ;;  %719 = vperm.xlu1 %1518, %v1840_v40   ;;  %v1683_v15 = vld [vmem:[%s2248_s3 + $0x8] sm:$0xff]  }
  0x98   : > { %v1531_v20 = vpack.i.bf16 %v488_v18, %v487_v19  ;;  %1444 = vmatprep.subr.bf16.mxu0 %v1683_v15  ;;  %1461 = vmatprep.subr.bf16.mxu1 %v1683_v15 }
  0x99   : > { %v466_v21 = vpop.permute.xlu0 %465  ;;  %v505_v22 = vpop.permute.xlu1 %504  ;;  %1445 = vmatpush3.bf16.msra.mxu0 %v1683_v15  ;;  %1466 = vmatpush3.bf16.msra.mxu1 %v1683_v15 }
  0x9a   : > { %1532 = vrot.lane.b32.xlu0 %v1531_v20, %s1704_s26  ;;  %vm527_vm13 = vcmp.eq.s32.totalorder %v505_v22, 1  ;;  %vm482_vm3 = vcmp.eq.s32.totalorder %v466_v21, 1  ;;  %v1684_v20 = vld [vmem:[%s2248_s3 + $0x10] sm:$0xff]  }
  0x9b   : > { %722 = vperm.xlu1 %1518, %v1790_v11   ;;  %v535_v29 = vsel %vm527_vm13, %v1939_v25, 0.0  ;;  %v490_v45 = vsel %vm482_vm3, %v1966_v38, 0.0  ;;  %1446 = vmatprep.subr.bf16.mxu0 %v1684_v20 }
  0x9c   : > { %1462 = vmatprep.subr.bf16.mxu1 %v1684_v20 }
  0x9d   : > { %v1936_v23 = vpop.permute.xlu0 %471  ;;  %v511_v24 = vpop.permute.xlu1 %510  ;;  %1447 = vmatpush3.bf16.msra.mxu0 %v1684_v20  ;;  %1467 = vmatpush3.bf16.msra.mxu1 %v1684_v20 }
  0x9e   : > { %vm529_vm7 = vcmp.eq.s32.totalorder %v511_v24, 1 }
  0x9f   : > { %1519 = vset.pattern.permute.xlu1 %v1696_v6  ;;  %v537_v54 = vsel %vm529_vm7, %v1978_v50, 0.0 }
  0xa0   : > { %360 = vperm.xlu1 %1519, %v1775_v8   ;;  %v1551_v8 = vpack.i.bf16 %v1947_v31, %v400_v1 }
  0xa1   : > { %v514_v27 = vpop.permute.xlu1 %513 }
  0xa2   : > { %v508_v28 = vpop.permute.xlu0 %507  ;;  %vm530_vm6 = vcmp.eq.s32.totalorder %v514_v27, 1 }
  0xa3   : > { %vm528_vm14 = vcmp.eq.s32.totalorder %v508_v28, 1  ;;  %v538_v52 = vsel %vm530_vm6, %v1974_v47, 0.0  ;;  %v2020_v28 = vld [vmem:[#allocation2 + $0x30] sm:$0xff] }
  0xa4   : > { %v536_v30 = vsel %vm528_vm14, %v1942_v26, 0.0  ;;  %366 = vperm.xlu1 %1519, %v1772_v7   ;;  %v1959_v7 = vld [vmem:[#allocation2 + $0x20] sm:$0xff]  ;;  %v1546_v56 = vpack.i.bf16 %v538_v52, %v537_v54 }
  0xa5   : > { %v1541_v11 = vpack.i.bf16 %v536_v30, %v535_v29  ;;  %v442_v36 = vsel %vm434_vm15, %v1959_v7, 0.0  ;;  %v1556_v60 = vpack.i.bf16 %v1985_v55, %v1959_v7  ;;  %v1685_v30 = vld [vmem:[%s2248_s3 + $0x18] sm:$0xff]  }
  0xa6   : > { %v1949_v6 = vpop.permute.xlu0 %516  ;;  %v564_v32 = vpop.permute.xlu1 %563  ;;  %1448 = vmatprep.subr.bf16.mxu0 %v1685_v30  ;;  %1463 = vmatprep.subr.bf16.mxu1 %v1685_v30 }
  0xa7   : > { %1542 = vrot.lane.b32.xlu0 %v1541_v11, %s1705_s27  ;;  %vm584_vm0 = vcmp.eq.s32.totalorder %v564_v32, 1  ;;  %1449 = vmatpush3.bf16.msra.mxu0 %v1685_v30 }
  0xa8   : > { %369 = vperm.xlu1 %1519, %v1780_v9   ;;  %v592_v39 = vsel %vm584_vm0, %v1964_v37, 0.0  ;;  %1468 = vmatpush3.bf16.msra.mxu1 %v1685_v30  ;;  %v550_v30 = vld [vmem:[#allocation2 + $0x48] sm:$0xff] }
  0xaa   : > { %v1954_v33 = vpop.permute.xlu0 %525  ;;  %v1956_v34 = vpop.permute.xlu1 %566 }
  0xab   : > { %1552 = vrot.lane.b32.xlu0 %v1551_v8, %s1706_s28  ;;  %vm585_vm11 = vcmp.eq.s32.totalorder %v1956_v34, 1 }
  0xac   : > { %375 = vperm.xlu1 %1519, %v1840_v40   ;;  %v441_v40 = vsel %vm433_vm1, %v1947_v31, 0.0  ;;  %v593_v5 = vsel %vm585_vm11, %v1966_v38, 0.0 }
  0xad   : > { %v1526_v43 = vpack.i.bf16 %v442_v36, %v441_v40 }
  0xaf   : > { %v561_v35 = vpop.permute.xlu0 %560  ;;  %v609_v9 = vpop.permute.xlu1 %608 }
  0xb0   : > { %vm583_vm2 = vcmp.eq.s32.totalorder %v561_v35, 1  ;;  %381 = vperm.xlu1 %1519, %v1863_v49   ;;  %v1536_v49 = vpack.i.bf16 %v490_v45, %v489_v48  ;;  %vm631_vm8 = vcmp.eq.s32.totalorder %v609_v9, 1  ;;  %v1686_v35 = vld [vmem:[%s2248_s3 + $0x20] ss:$0 sps:$4 sm:$0xff]  }
  0xb1   : > { %v591_v41 = vsel %vm583_vm2, %v448_v14, 0.0  ;;  %v639_v61 = vsel %vm631_vm8, %v1942_v26, 0.0  ;;  %1470 = vmatprep.subr.msk.bf16.mxu0 %vm1123_vm4, %v1686_v35  ;;  %v1125_v9 = vsel %vm1123_vm4, %v1686_v35, 0  ;;  %1471 = vmatprep.subr.msk.bf16.mxu1 %vm1123_vm4, %v1686_v35  ;;  %vm437_vm8 = vcmp.eq.s32.totalorder %v1926_v12, 1 }
  0xb2   : > { %v1561_v42 = vpack.i.bf16 %v592_v39, %v591_v41  ;;  %1451 = vmatpush3.bf16.msra.mxu0 %v1125_v9  ;;  %1469 = vmatpush3.bf16.msra.mxu1 %v1125_v9 }
  0xb3   : > { %v570_v44 = vpop.permute.xlu0 %569  ;;  %v615_v46 = vpop.permute.xlu1 %614 }
  0xb4   : > { %1562 = vrot.lane.b32.xlu0 %v1561_v42, %s1707_s29  ;;  %1527 = vrot.lane.b32.xlu1 %v1526_v43, %s1703_s25  ;;  %vm586_vm9 = vcmp.eq.s32.totalorder %v570_v44, 1  ;;  %vm633_vm13 = vcmp.eq.s32.totalorder %v615_v46, 1  ;;  %v2037_v42 = vld [vmem:[#allocation2 + $0x38] sm:$0xff]  ;;  %v2041_v44 = vld [vmem:[#allocation2 + $0x40] sm:$0xff] }
  0xb5   : > { %v594_v0 = vsel %vm586_vm9, %v1987_v58, 0.0  ;;  %v641_v16 = vsel %vm633_vm13, %v1974_v47, 0.0  ;;  %v445_v52 = vsel %vm437_vm8, %v2037_v42, 0.0 }
  0xb6   : > { %v1566_v10 = vpack.i.bf16 %v594_v0, %v593_v5 }
  0xb7   : > { %v1980_v51 = vpop.permute.xlu0 %575  ;;  %v618_v53 = vpop.permute.xlu1 %617 }
  0xb8   : > { %1537 = vrot.lane.b32.xlu1 %v1536_v49, %s1704_s26  ;;  %vm634_vm12 = vcmp.eq.s32.totalorder %v618_v53, 1  ;;  %v452_v53 = vld [vmem:[#allocation2 + $0x31] sm:$0xff] }
  0xb9   : > { %v642_v13 = vsel %vm634_vm12, %v1998_v2, 0.0  ;;  %vm484_vm12 = vcmp.eq.s32.totalorder %v1936_v23, 1  ;;  %v2057_v23 = vld [vmem:[#allocation2 + $0x41] sm:$0xff] }
  0xba   : > { %v1576_v18 = vpack.i.bf16 %v642_v13, %v641_v16  ;;  %v603_v16 = vld [vmem:[#allocation2 + $0x37] sm:$0xff] }
  0xbc   : > { %v612_v57 = vpop.permute.xlu0 %611  ;;  %v660_v59 = vpop.permute.xlu1 %659  ;;  %1547 = vrot.lane.b32.xlu1 %v1546_v56, %s1705_s27 }
  0xbd   : > { %vm632_vm10 = vcmp.eq.s32.totalorder %v612_v57, 1  ;;  %vm680_vm14 = vcmp.eq.s32.totalorder %v660_v59, 1  ;;  %v492_v59 = vsel %vm484_vm12, %v452_v53, 0.0 }
  0xbe   : > { %v640_v62 = vsel %vm632_vm10, %v1978_v50, 0.0  ;;  %v688_v21 = vsel %vm680_vm14, %v1959_v7, 0.0 }
  0xbf   : > { %v1571_v63 = vpack.i.bf16 %v640_v62, %v639_v61 }
  0xc0   : > { %v1996_v1 = vpop.permute.xlu0 %620  ;;  %v663_v3 = vpop.permute.xlu1 %662  ;;  %1557 = vrot.lane.b32.xlu1 %v1556_v60, %s1706_s28 }
  0xc1   : > { %1572 = vrot.lane.b32.xlu0 %v1571_v63, %s1708_s30  ;;  %vm681_vm0 = vcmp.eq.s32.totalorder %v663_v3, 1  ;;  %v2059_v3 = vld [vmem:[#allocation2 + $0x39] sm:$0xff] }
  0xc2   : > { %v689_v11 = vsel %vm681_vm0, %v1985_v55, 0.0  ;;  %vm531_vm0 = vcmp.eq.s32.totalorder %v1949_v6, 1  ;;  %v1631_v6 = vpack.i.bf16 %v2037_v42, %v2020_v28 }
  0xc4   : > { %v2007_v14 = vpop.permute.xlu0 %629  ;;  %1567 = vrot.lane.b32.xlu1 %v1566_v10, %s1707_s29 }
  0xc5   : > { %v705_v17 = vpop.permute.xlu1 %704  ;;  %vm638_vm12 = vcmp.eq.s32.totalorder %v2007_v14, 1 }
  0xc6   : > { %vm727_vm6 = vcmp.eq.s32.totalorder %v705_v17, 1  ;;  %v539_v17 = vsel %vm531_vm0, %v1998_v2, 0.0 }
  0xc7   : > { %v735_v43 = vsel %vm727_vm6, %v1964_v37, 0.0  ;;  %vm588_vm6 = vcmp.eq.s32.totalorder %v1980_v51, 1 }
  0xc8   : > { %1577 = vrot.lane.b32.xlu1 %v1576_v18, %s1708_s30 }
  0xc9   : > { %v657_v19 = vpop.permute.xlu0 %656 }
  0xca   : > { %vm679_vm15 = vcmp.eq.s32.totalorder %v657_v19, 1  ;;  %v421_v24 = vpop.permute.xlu1 %420  ;;  %v502_v19 = vld [vmem:[#allocation2 + $0x47] sm:$0xff] }
  0xcb   : > { %v687_v22 = vsel %vm679_vm15, %v1947_v31, 0.0  ;;  %vm435_vm2 = vcmp.eq.s32.totalorder %v421_v24, 1 }
  0xcc   : > { %v1581_v27 = vpack.i.bf16 %v688_v21, %v687_v22  ;;  %v443_v36 = vsel %vm435_vm2, %v1985_v55, 0.0  ;;  %vm534_vm2 = vcmp.eq.s32.totalorder %v1954_v33, 1  ;;  %v2071_v21 = vld [vmem:[#allocation2 + $0x3f] sm:$0xff] }
  0xcd   : > { %v666_v29 = vpop.permute.xlu0 %665 }
  0xce   : > { %vm682_vm1 = vcmp.eq.s32.totalorder %v666_v29, 1  ;;  %1582 = vrot.lane.b32.xlu0 %v1581_v27, %s1709_s16  ;;  %v424_v32 = vpop.permute.xlu1 %423  ;;  %v542_v27 = vsel %vm534_vm2, %v502_v19, 0.0 }
  0xcf   : > { %v690_v31 = vsel %vm682_vm1, %v2020_v28, 0.0  ;;  %vm436_vm3 = vcmp.eq.s32.totalorder %v424_v32, 1  ;;  %v1636_v32 = vpack.i.bf16 %v550_v30, %v2041_v44 }
  0xd0   : > { %v1586_v8 = vpack.i.bf16 %v690_v31, %v689_v11  ;;  %v444_v34 = vsel %vm436_vm3, %v2020_v28, 0.0  ;;  %v596_v28 = vsel %vm588_vm6, %v2059_v3, 0.0 }
  0xd1   : > { %v2029_v7 = vpop.permute.xlu0 %671  ;;  %v1596_v39 = vpack.i.bf16 %v444_v34, %v443_v36  ;;  %v558_v36 = vld [vmem:[#allocation2 + $0x49] sm:$0xff] }
  0xd2   : > { %1587 = vrot.lane.b32.xlu1 %v1586_v8, %s1709_s16 }
  0xd3   : > { %v714_v41 = vpop.permute.xlu1 %713 }
  0xd4   : > { %vm730_vm9 = vcmp.eq.s32.totalorder %v714_v41, 1 }
  0xd5   : > { %v738_v12 = vsel %vm730_vm9, %v452_v53, 0.0 }
  0xd6   : > { %v708_v40 = vpop.permute.xlu0 %707  ;;  %1597 = vrot.lane.b32.xlu1 %v1596_v39, %s1703_s25 }
  0xd7   : > { %vm728_vm7 = vcmp.eq.s32.totalorder %v708_v40, 1 }
  0xd8   : > { %v736_v45 = vsel %vm728_vm7, %v1966_v38, 0.0  ;;  %v430_v48 = vpop.permute.xlu1 %429 }
  0xd9   : > { %v1591_v46 = vpack.i.bf16 %v736_v45, %v735_v43  ;;  %vm438_vm10 = vcmp.eq.s32.totalorder %v430_v48, 1 }
  0xda   : > { %v711_v49 = vpop.permute.xlu0 %710  ;;  %v446_v54 = vsel %vm438_vm10, %v2041_v44, 0.0  ;;  %vm635_vm10 = vcmp.eq.s32.totalorder %v1996_v1, 1 }
  0xdb   : > { %vm729_vm11 = vcmp.eq.s32.totalorder %v711_v49, 1  ;;  %1592 = vrot.lane.b32.xlu0 %v1591_v46, %s1710_s19  ;;  %v1606_v37 = vpack.i.bf16 %v446_v54, %v445_v52  ;;  %v643_v43 = vsel %vm635_vm10, %v603_v16, 0.0  ;;  %v606_v46 = vld [vmem:[#allocation2 + $0x4f] sm:$0xff]  ;;  %vm1016_vm10 = vcmask 195584  }
  0xdc   : > { %v737_v55 = vsel %vm729_vm11, %v1987_v58, 0.0  ;;  %v646_v52 = vsel %vm638_vm12, %v606_v46, 0.0  ;;  %vm1034_vm12 = vcmask 326656  }
  0xdd   : > { %v1601_v38 = vpack.i.bf16 %v738_v12, %v737_v55  ;;  %v469_v56 = vpop.permute.xlu1 %468  ;;  %1607 = vrot.lane.b32.xlu1 %v1606_v37, %s1703_s25 }
  0xde   : > { %v2050_v57 = vpop.permute.xlu0 %716  ;;  %vm483_vm13 = vcmp.eq.s32.totalorder %v469_v56, 1 }
  0xdf   : > { %1602 = vrot.lane.b32.xlu0 %v1601_v38, %s1710_s19  ;;  %v491_v60 = vsel %vm483_vm13, %v1987_v58, 0.0  ;;  %v654_v38 = vld [vmem:[#allocation2 + $0x50] sm:$0xff]  ;;  %vm731_vm2 = vcmp.eq.s32.totalorder %v2050_v57, 1 }
  0xe0   : > { %v1611_v61 = vpack.i.bf16 %v492_v59, %v491_v60 }
  0xe1   : > { %v475_v62 = vpop.permute.xlu1 %474 }
  0xe2   : > { %v2054_v63 = vpop.permute.xlu0 %725  ;;  %vm485_vm14 = vcmp.eq.s32.totalorder %v475_v62, 1  ;;  %v702_v62 = vld [vmem:[#allocation2 + $0x51] sm:$0xff] }
  0xe3   : > { %1612 = vrot.lane.b32.xlu0 %v1611_v61, %s1704_s26  ;;  %v493_v5 = vsel %vm485_vm14, %v2059_v3, 0.0  ;;  %vm684_vm14 = vcmp.eq.s32.totalorder %v2029_v7, 1 }
  0xe4   : > { %v692_v12 = vsel %vm684_vm14, %v2041_v44, 0.0  ;;  %v739_v44 = vsel %vm731_vm2, %v2059_v3, 0.0  ;;  %vm1043_vm14 = vcmask 392192   ;;  %vm1110_vm2 = vcmask 588800  }
  0xe5   : > { %v478_v0 = vpop.permute.xlu1 %477 }
  0xe6   : > { %vm486_vm15 = vcmp.eq.s32.totalorder %v478_v0, 1 }
  0xe7   : > { %v2061_v4 = vpop.permute.xlu0 %363  ;;  %v494_v10 = vsel %vm486_vm15, %v2057_v23, 0.0 }
  0xe8   : > { %v1616_v58 = vpack.i.bf16 %v494_v10, %v493_v5 }
  0xea   : > { %v520_v13 = vpop.permute.xlu1 %519  ;;  %1617 = vrot.lane.b32.xlu1 %v1616_v58, %s1704_s26 }
  0xeb   : > { %v2067_v15 = vpop.permute.xlu0 %372  ;;  %vm532_vm1 = vcmp.eq.s32.totalorder %v520_v13, 1 }
  0xec   : > { %v540_v18 = vsel %vm532_vm1, %v603_v16, 0.0 }
  0xed   : > { %v1621_v20 = vpack.i.bf16 %v540_v18, %v539_v17 }
  0xee   : > { %v523_v22 = vpop.permute.xlu1 %522 }
  0xef   : > { %v379_v24 = vpop.permute.xlu0 %378  ;;  %vm533_vm3 = vcmp.eq.s32.totalorder %v523_v22, 1  ;;  %1622 = vrot.lane.b32.xlu0 %v1621_v20, %s1705_s27 }
  0xf0   : > { %vm389_vm4 = vcmp.eq.s32.totalorder %v379_v24, 1  ;;  %v541_v29 = vsel %vm533_vm3, %v2071_v21, 0.0  ;;  %v335_v24 = vld [vmem:[#allocation2 + $0x7] sm:$0xff] }
  0xf1   : > { %v2077_v11 = vsel %vm389_vm4, %v603_v16, 0.0  ;;  %v1626_v31 = vpack.i.bf16 %v542_v27, %v541_v29  ;;  %vm734_vm4 = vcmp.eq.s32.totalorder %v2054_v63, 1 }
  0xf2   : > { %v742_v10 = vsel %vm734_vm4, %v702_v62, 0.0 }
  0xf3   : > { %v573_v33 = vpop.permute.xlu1 %572  ;;  %1627 = vrot.lane.b32.xlu1 %v1626_v31, %s1705_s27  ;;  %1632 = vrot.lane.b32.xlu0 %v1631_v6, %s1706_s28  ;;  %s262_s27 = scalar_lea.vmem %s2251_s6, %s1382_s9 }
  0xf4   : > { %vm587_vm7 = vcmp.eq.s32.totalorder %v573_v33, 1 }
  0xf5   : > { %v595_v8 = vsel %vm587_vm7, %v452_v53, 0.0 }
  0xf6   : > { %v1641_v34 = vpack.i.bf16 %v596_v28, %v595_v8 }
  0xf7   : > { %v579_v35 = vpop.permute.xlu1 %578  ;;  %1637 = vrot.lane.b32.xlu1 %v1636_v32, %s1706_s28 }
  0xf8   : > { %1642 = vrot.lane.b32.xlu0 %v1641_v34, %s1707_s29  ;;  %vm589_vm8 = vcmp.eq.s32.totalorder %v579_v35, 1 }
  0xf9   : > { %v597_v9 = vsel %vm589_vm8, %v2057_v23, 0.0  ;;  %vm384_vm8 = vcmp.eq.s32.totalorder %v2061_v4, 1 }
  0xfa   : > { %v392_v33 = vsel %vm384_vm8, %v1939_v25, 0.0  ;;  %vm1242_vm8 = vcmask 1040384  }
  0xfb   : > { %v582_v51 = vpop.permute.xlu1 %581 }
  0xfc   : > { %vm590_vm9 = vcmp.eq.s32.totalorder %v582_v51, 1 }
  0xfd   : > { %v598_v39 = vsel %vm590_vm9, %v558_v36, 0.0  ;;  %vm1007_vm9 = vcmask 130048  }
  0xfe   : > { %v1646_v41 = vpack.i.bf16 %v598_v39, %v597_v9 }
 0x100   : > { %v624_v40 = vpop.permute.xlu1 %623  ;;  %1647 = vrot.lane.b32.xlu1 %v1646_v41, %s1707_s29 }
 0x101   : > { %vm636_vm11 = vcmp.eq.s32.totalorder %v624_v40, 1 }
 0x102   : > { %v644_v45 = vsel %vm636_vm11, %v2071_v21, 0.0  ;;  %v1523_v18 = vpop.permute.xlu0 %1522  ;;  %vm1025_vm11 = vcmask 261120  }
 0x103   : > { %v1651_v48 = vpack.i.bf16 %v644_v45, %v643_v43  ;;  %v1524_v6 = vunpack.i.l.bf16 %v1523_v18  ;;  %v1525_v31 = vunpack.i.h.bf16 %v1523_v18 }
 0x104   : > { %v627_v49 = vpop.permute.xlu1 %626 }
 0x105   : > { %vm637_vm13 = vcmp.eq.s32.totalorder %v627_v49, 1  ;;  %1652 = vrot.lane.b32.xlu0 %v1651_v48, %s1708_s30 }
 0x106   : > { %v645_v53 = vsel %vm637_vm13, %v502_v19, 0.0 }
 0x107   : > { %v1656_v54 = vpack.i.bf16 %v646_v52, %v645_v53 }
 0x109   : > { %v669_v1 = vpop.permute.xlu1 %668  ;;  %1657 = vrot.lane.b32.xlu1 %v1656_v54, %s1708_s30 }
 0x10a   : > { %vm683_vm15 = vcmp.eq.s32.totalorder %v669_v1, 1 }
 0x10b   : > { %v691_v37 = vsel %vm683_vm15, %v2037_v42, 0.0 }
 0x10c   : > { %v1661_v55 = vpack.i.bf16 %v692_v12, %v691_v37  ;;  %v1533_v19 = vpop.permute.xlu0 %1532 }
 0x10d   : > { %v675_v14 = vpop.permute.xlu1 %674  ;;  %v1535_v8 = vunpack.i.h.bf16 %v1533_v19  ;;  %v1534_v34 = vunpack.i.l.bf16 %v1533_v19 }
 0x10e   : > { %1662 = vrot.lane.b32.xlu0 %v1661_v55, %s1709_s16  ;;  %vm685_vm0 = vcmp.eq.s32.totalorder %v675_v14, 1 }
 0x10f   : > { %v693_v59 = vsel %vm685_vm0, %v550_v30, 0.0  ;;  %vm1052_vm0 = vcmask 457728  }
 0x111   : > { %v678_v56 = vpop.permute.xlu1 %677 }
 0x112   : > { %vm686_vm1 = vcmp.eq.s32.totalorder %v678_v56, 1 }
 0x113   : > { %v694_v60 = vsel %vm686_vm1, %v654_v38, 0.0  ;;  %vm1061_vm1 = vcmask 523264  }
 0x114   : > { %v1666_v61 = vpack.i.bf16 %v694_v60, %v693_v59 }
 0x116   : > { %v720_v7 = vpop.permute.xlu1 %719  ;;  %1667 = vrot.lane.b32.xlu1 %v1666_v61, %s1709_s16 }
 0x117   : > { %vm732_vm3 = vcmp.eq.s32.totalorder %v720_v7, 1 }
 0x118   : > { %v740_v42 = vsel %vm732_vm3, %v2057_v23, 0.0  ;;  %vm387_vm3 = vcmp.eq.s32.totalorder %v2067_v15, 1 }
 0x119   : > { %v1671_v0 = vpack.i.bf16 %v740_v42, %v739_v44  ;;  %v1543_v20 = vpop.permute.xlu0 %1542 }
 0x11a   : > { %v723_v5 = vpop.permute.xlu1 %722  ;;  %v1545_v51 = vunpack.i.h.bf16 %v1543_v20  ;;  %v1544_v9 = vunpack.i.l.bf16 %v1543_v20 }
 0x11b   : > { %vm733_vm6 = vcmp.eq.s32.totalorder %v723_v5, 1  ;;  %1672 = vrot.lane.b32.xlu0 %v1671_v0, %s1710_s19 }
 0x11c   : > { %v741_v58 = vsel %vm733_vm6, %v558_v36, 0.0  ;;  %v1000_v36 = vsel %vm318_vm5, %v392_v33, %v1525_v31 }
 0x11d   : > { %v1676_v13 = vpack.i.bf16 %v742_v10, %v741_v58  ;;  %v1553_v27 = vpop.permute.xlu0 %1552  ;;  %v1009_v25 = vsel %vm1007_vm9, %v1000_v36, %v1535_v8 }
 0x11e   : > { %v1555_v39 = vunpack.i.h.bf16 %v1553_v27  ;;  %v1554_v40 = vunpack.i.l.bf16 %v1553_v27  ;;  %v1018_v49 = vsel %vm1016_vm10, %v1009_v25, %v1545_v51 }
 0x11f   : > { %v361_v57 = vpop.permute.xlu1 %360  ;;  %1677 = vrot.lane.b32.xlu1 %v1676_v13, %s1710_s19 }
 0x120   : > { %vm383_vm7 = vcmp.eq.s32.totalorder %v361_v57, 1  ;;  %v1027_v54 = vsel %vm1025_vm11, %v1018_v49, %v1555_v39 }
 0x121   : > { %v391_v29 = vsel %vm383_vm7, %v335_v24, 0.0  ;;  %vm1278_vm7 = vcmask 60416  }
 0x122   : > { %v999_v32 = vsel %vm318_vm5, %v391_v29, %v1524_v6 }
 0x123   : > { %v367_v16 = vpop.permute.xlu1 %366  ;;  %v1008_v4 = vsel %vm1007_vm9, %v999_v32, %v1534_v34 }
 0x124   : > { %vm385_vm13 = vcmp.eq.s32.totalorder %v367_v16, 1  ;;  %v1017_v45 = vsel %vm1016_vm10, %v1008_v4, %v1544_v9 }
 0x125   : > { %v393_v1 = vsel %vm385_vm13, %v1942_v26, 0.0  ;;  %v1026_v55 = vsel %vm1025_vm11, %v1017_v45, %v1554_v40 }
 0x126   : > { %v1563_v28 = vpop.permute.xlu0 %1562 }
 0x127   : > { %v370_v17 = vpop.permute.xlu1 %369  ;;  %v1565_v46 = vunpack.i.h.bf16 %v1563_v28  ;;  %v1564_v48 = vunpack.i.l.bf16 %v1563_v28 }
 0x128   : > { %vm386_vm15 = vcmp.eq.s32.totalorder %v370_v17, 1 }
 0x129   : > { %v394_v14 = vsel %vm386_vm15, %v1978_v50, 0.0  ;;  %v1035_v61 = vsel %vm1034_vm12, %v1026_v55, %v1564_v48  ;;  %v1036_v7 = vsel %vm1034_vm12, %v1027_v54, %v1565_v46 }
 0x12b   : > { %v2104_v3 = vpop.permute.xlu1 %375 }
 0x12c   : > { %vm388_vm4 = vcmp.eq.s32.totalorder %v2104_v3, 1 }
 0x12f   : > { %v2106_v23 = vpop.permute.xlu1 %381 }
 0x130   : > { %vm390_vm6 = vcmp.eq.s32.totalorder %v2106_v23, 1 }
 0x133   : > { %v1528_v63 = vpop.permute.xlu1 %1527  ;;  %v1573_v41 = vpop.permute.xlu0 %1572 }
 0x134   : > { %v1575_v52 = vunpack.i.h.bf16 %v1573_v41  ;;  %v1574_v53 = vunpack.i.l.bf16 %v1573_v41  ;;  %v1530_v12 = vunpack.i.h.bf16 %v1528_v63  ;;  %v1529_v37 = vunpack.i.l.bf16 %v1528_v63 }
 0x136   : > { %v1044_v26 = vsel %vm1043_vm14, %v1035_v61, %v1574_v53  ;;  %v1045_v62 = vsel %vm1043_vm14, %v1036_v7, %v1575_v52  ;;  %v1001_v50 = vsel %vm318_vm5, %v393_v1, %v1529_v37  ;;  %v1002_v0 = vsel %vm318_vm5, %v394_v14, %v1530_v12 }
 0x137   : > { %v2108_v22 = vpop.permute.xlu1 %1537 }
 0x138   : > { %v1540_v38 = vunpack.i.h.bf16 %v2108_v22  ;;  %v1539_v56 = vunpack.i.l.bf16 %v2108_v22 }
 0x13a   : > { %v1010_v58 = vsel %vm1007_vm9, %v1001_v50, %v1539_v56  ;;  %v1011_v13 = vsel %vm1007_vm9, %v1002_v0, %v1540_v38 }
 0x13b   : > { %v1548_v30 = vpop.permute.xlu1 %1547 }
 0x13c   : > { %v1550_v44 = vunpack.i.h.bf16 %v1548_v30  ;;  %v1549_v42 = vunpack.i.l.bf16 %v1548_v30 }
 0x13e   : > { %v1019_v18 = vsel %vm1016_vm10, %v1010_v58, %v1549_v42  ;;  %v1020_v19 = vsel %vm1016_vm10, %v1011_v13, %v1550_v44  ;;  %v396_v44 = vsel %vm388_vm4, %v1998_v2, 0.0  ;;  %v398_v42 = vsel %vm390_vm6, %v2071_v21, 0.0 }
 0x13f   : > { %v2113_v35 = vpop.permute.xlu1 %1557 }
 0x140   : > { %v1583_v59 = vpop.permute.xlu0 %1582  ;;  %v1560_v57 = vunpack.i.h.bf16 %v2113_v35  ;;  %v1559_v16 = vunpack.i.l.bf16 %v2113_v35 }
 0x141   : > { %v1585_v5 = vunpack.i.h.bf16 %v1583_v59  ;;  %v1584_v10 = vunpack.i.l.bf16 %v1583_v59 }
 0x142   : > { %v1028_v28 = vsel %vm1025_vm11, %v1019_v18, %v1559_v16  ;;  %v1029_v8 = vsel %vm1025_vm11, %v1020_v19, %v1560_v57 }
 0x143   : > { %v1568_v43 = vpop.permute.xlu1 %1567  ;;  %v1053_v33 = vsel %vm1052_vm0, %v1044_v26, %v1584_v10  ;;  %v1054_v32 = vsel %vm1052_vm0, %v1045_v62, %v1585_v5 }
 0x144   : > { %v1570_v63 = vunpack.i.h.bf16 %v1568_v43  ;;  %v1569_v20 = vunpack.i.l.bf16 %v1568_v43 }
 0x146   : > { %v1037_v36 = vsel %vm1034_vm12, %v1028_v28, %v1569_v20  ;;  %v1038_v51 = vsel %vm1034_vm12, %v1029_v8, %v1570_v63 }
 0x147   : > { %v1578_v60 = vpop.permute.xlu1 %1577 }
 0x148   : > { %v1580_v24 = vunpack.i.h.bf16 %v1578_v60  ;;  %v1579_v6 = vunpack.i.l.bf16 %v1578_v60  ;;  %v395_v60 = vsel %vm387_vm3, %v1974_v47, 0.0 }
 0x14a   : > { %v1046_v39 = vsel %vm1043_vm14, %v1037_v36, %v1579_v6  ;;  %v1047_v41 = vsel %vm1043_vm14, %v1038_v51, %v1580_v24 }
 0x14b   : > { %v1588_v17 = vpop.permute.xlu1 %1587 }
 0x14c   : > { %v1590_v30 = vunpack.i.h.bf16 %v1588_v17  ;;  %v1589_v31 = vunpack.i.l.bf16 %v1588_v17 }
 0x14d   : > { %v1593_v22 = vpop.permute.xlu0 %1592 }
 0x14e   : > { %v1595_v27 = vunpack.i.h.bf16 %v1593_v22  ;;  %v1594_v29 = vunpack.i.l.bf16 %v1593_v22  ;;  %v1055_v43 = vsel %vm1052_vm0, %v1046_v39, %v1589_v31  ;;  %v1056_v45 = vsel %vm1052_vm0, %v1047_v41, %v1590_v30 }
 0x14f   : > { %v1598_v52 = vpop.permute.xlu1 %1597 }
 0x150   : > { %v1062_v34 = vsel %vm1061_vm1, %v1053_v33, %v1594_v29  ;;  %v1063_v35 = vsel %vm1061_vm1, %v1054_v32, %v1595_v27  ;;  %v1600_v56 = vunpack.i.h.bf16 %v1598_v52  ;;  %v1599_v59 = vunpack.i.l.bf16 %v1598_v52 }
 0x151   : > { %v1603_v4 = vpop.permute.xlu0 %1602  ;;  %v1070_v9 = vpack.c.bf16 %v1063_v35, %v1062_v34 }
 0x152   : > { %v1605_v25 = vunpack.i.h.bf16 %v1603_v4  ;;  %v1604_v40 = vunpack.i.l.bf16 %v1603_v4  ;;  %v1004_v0 = vsel %vm318_vm5, %v396_v44, %v1600_v56  ;;  %v1003_v3 = vsel %vm318_vm5, %v395_v60, %v1599_v59 }
 0x153   : > { %1452 = vmatprep.mubr.msk.bf16.mxu0 %vm1110_vm2, %v1070_v9  ;;  %v1608_v54 = vpop.permute.xlu1 %1607 }
 0x154   : > { %v1065_v46 = vsel %vm1061_vm1, %v1056_v45, %v1605_v25  ;;  %v1064_v48 = vsel %vm1061_vm1, %v1055_v43, %v1604_v40  ;;  %v1610_v61 = vunpack.i.h.bf16 %v1608_v54  ;;  %v1609_v7 = vunpack.i.l.bf16 %v1608_v54 }
 0x155   : > { %v1071_v49 = vpack.c.bf16 %v1065_v46, %v1064_v48  ;;  %v1613_v53 = vpop.permute.xlu0 %1612 }
 0x156   : > { %v1615_v26 = vunpack.i.h.bf16 %v1613_v53  ;;  %v1614_v62 = vunpack.i.l.bf16 %v1613_v53  ;;  %v1006_v57 = vsel %vm318_vm5, %v398_v42, %v1610_v61  ;;  %v1005_v2 = vsel %vm318_vm5, %v2077_v11, %v1609_v7 }
 0x157   : > { %1453 = vmatmul.mubr.msk.bf16.vlgmr.msra.gmra.mrb[0].mxu0 %vm1110_vm2, %v1071_v49 }
 0x158   : > { %v1013_v17 = vsel %vm1007_vm9, %v1004_v0, %v1615_v26  ;;  %v1012_v18 = vsel %vm1007_vm9, %v1003_v3, %v1614_v62 }
 0x15c   : > { %v1618_v12 = vpop.permute.xlu1 %1617 }
 0x15d   : > { %v1620_v5 = vunpack.i.h.bf16 %v1618_v12  ;;  %v1619_v23 = vunpack.i.l.bf16 %v1618_v12 }
 0x15f   : > { %v1014_v24 = vsel %vm1007_vm9, %v1005_v2, %v1619_v23  ;;  %v1015_v6 = vsel %vm1007_vm9, %v1006_v57, %v1620_v5 }
 0x161   : > { %v1623_v1 = vpop.permute.xlu0 %1622 }
 0x162   : > { %v1625_v10 = vunpack.i.h.bf16 %v1623_v1  ;;  %v1624_v58 = vunpack.i.l.bf16 %v1623_v1 }
 0x164   : > { %v1021_v30 = vsel %vm1016_vm10, %v1012_v18, %v1624_v58  ;;  %v1022_v11 = vsel %vm1016_vm10, %v1013_v17, %v1625_v10 }
 0x165   : > { %v1628_v37 = vpop.permute.xlu1 %1627  ;;  %v1633_v55 = vpop.permute.xlu0 %1632 }
 0x166   : > { %v1630_v13 = vunpack.i.h.bf16 %v1628_v37  ;;  %v1629_v47 = vunpack.i.l.bf16 %v1628_v37  ;;  %v1635_v21 = vunpack.i.h.bf16 %v1633_v55  ;;  %v1634_v16 = vunpack.i.l.bf16 %v1633_v55 }
 0x168   : > { %v1023_v31 = vsel %vm1016_vm10, %v1014_v24, %v1629_v47  ;;  %v1024_v33 = vsel %vm1016_vm10, %v1015_v6, %v1630_v13  ;;  %v1030_v32 = vsel %vm1025_vm11, %v1021_v30, %v1634_v16  ;;  %v1031_v28 = vsel %vm1025_vm11, %v1022_v11, %v1635_v21 }
 0x169   : > { %v2155_v14 = vpop.permute.xlu1 %1637 }
 0x16a   : > { %v1643_v38 = vpop.permute.xlu0 %1642  ;;  %v1640_v35 = vunpack.i.h.bf16 %v2155_v14  ;;  %v1639_v36 = vunpack.i.l.bf16 %v2155_v14 }
 0x16b   : > { %v1645_v19 = vunpack.i.h.bf16 %v1643_v38  ;;  %v1644_v63 = vunpack.i.l.bf16 %v1643_v38 }
 0x16c   : > { %v1032_v12 = vsel %vm1025_vm11, %v1023_v31, %v1639_v36  ;;  %v1033_v37 = vsel %vm1025_vm11, %v1024_v33, %v1640_v35 }
 0x16d   : > { %v1039_v51 = vsel %vm1034_vm12, %v1030_v32, %v1644_v63  ;;  %v1040_v4 = vsel %vm1034_vm12, %v1031_v28, %v1645_v19 }
 0x172   : > { %v1648_v15 = vpop.permute.xlu1 %1647 }
 0x173   : > { %v1650_v39 = vunpack.i.h.bf16 %v1648_v15  ;;  %v1649_v41 = vunpack.i.l.bf16 %v1648_v15 }
 0x175   : > { %v1041_v38 = vsel %vm1034_vm12, %v1032_v12, %v1649_v41  ;;  %v1042_v56 = vsel %vm1034_vm12, %v1033_v37, %v1650_v39 }
 0x177   : > { %v1653_v50 = vpop.permute.xlu0 %1652 }
 0x178   : > { %v1655_v27 = vunpack.i.h.bf16 %v1653_v50  ;;  %v1654_v29 = vunpack.i.l.bf16 %v1653_v50 }
 0x17a   : > { %v1048_v25 = vsel %vm1043_vm14, %v1039_v51, %v1654_v29  ;;  %v1049_v40 = vsel %vm1043_vm14, %v1040_v4, %v1655_v27 }
 0x17b   : > { %v1658_v20 = vpop.permute.xlu1 %1657 }
 0x17c   : > { %v1660_v45 = vunpack.i.h.bf16 %v1658_v20  ;;  %v1659_v46 = vunpack.i.l.bf16 %v1658_v20 }
 0x17e   : > { %v1050_v61 = vsel %vm1043_vm14, %v1041_v38, %v1659_v46  ;;  %v1051_v7 = vsel %vm1043_vm14, %v1042_v56, %v1660_v45 }
 0x180   : > { %v1663_v22 = vpop.permute.xlu0 %1662 }
 0x181   : > { %v1665_v8 = vunpack.i.h.bf16 %v1663_v22  ;;  %v1664_v34 = vunpack.i.l.bf16 %v1663_v22 }
 0x183   : > { %v1057_v54 = vsel %vm1052_vm0, %v1048_v25, %v1664_v34  ;;  %v1058_v1 = vsel %vm1052_vm0, %v1049_v40, %v1665_v8 }
 0x188   : > { %v1668_v9 = vpop.permute.xlu1 %1667 }
 0x189   : > { %v1670_v52 = vunpack.i.h.bf16 %v1668_v9  ;;  %v1669_v53 = vunpack.i.l.bf16 %v1668_v9 }
 0x18b   : > { %v1059_v26 = vsel %vm1052_vm0, %v1050_v61, %v1669_v53  ;;  %v1060_v62 = vsel %vm1052_vm0, %v1051_v7, %v1670_v52 }
 0x18d   : > { %v1673_v43 = vpop.permute.xlu0 %1672 }
 0x18e   : > { %v1675_v48 = vunpack.i.h.bf16 %v1673_v43  ;;  %v1674_v49 = vunpack.i.l.bf16 %v1673_v43 }
 0x190   : > { %v1066_v55 = vsel %vm1061_vm1, %v1057_v54, %v1674_v49  ;;  %v1067_v14 = vsel %vm1061_vm1, %v1058_v1, %v1675_v48 }
 0x191   : > { %v1678_v59 = vpop.permute.xlu1 %1677  ;;  %v1072_v60 = vpack.c.bf16 %v1067_v14, %v1066_v55 }
 0x192   : > { %v1680_v44 = vunpack.i.h.bf16 %v1678_v59  ;;  %v1679_v42 = vunpack.i.l.bf16 %v1678_v59 }
 0x193   : > { %1456 = vmatprep.mubr.msk.bf16.mxu1 %vm1110_vm2, %v1072_v60 }
 0x194   : > { %v1068_v15 = vsel %vm1061_vm1, %v1059_v26, %v1679_v42  ;;  %v1069_v50 = vsel %vm1061_vm1, %v1060_v62, %v1680_v44 }
 0x195   : > { %v1073_v0 = vpack.c.bf16 %v1069_v50, %v1068_v15 }
 0x197   : > { %1457 = vmatmul.mubr.msk.bf16.vlgmr.msra.gmra.mrb[0].mxu1 %vm1110_vm2, %v1073_v0 }
 0x22a   : > { %v1454_v3 = vpop.f32.mrb[0].mxu0 }
 0x22b   : > { %v1408_v5 = vpack.c.bf16 %v1454_v3, %v1454_v3  ;;  %v1161_v23 = vpop.f32.mrb[1].mxu0  ;;  %v1215_v47 = vmul.f32 %v1454_v3, %v1454_v3  ;;  %v1195_v63 = vsel %vm318_vm5, %v1454_v3, 0.0 }
 0x22c   : > { %v1213_v10 = vmul.f32 %v1161_v23, %v1161_v23  ;;  %v1406_v58 = vpack.c.bf16 %v1161_v23, %v1161_v23  ;;  %v1455_v13 = vpop.f32.mrb[2].mxu0  ;;  %v1192_v21 = vsel %vm318_vm5, %v1161_v23, 0.0 }
 0x22d   : > { %1281 = vst.msk [vmem:[%s2204_s24 + $0x8] sm:$0xf] %vm1278_vm7, %v1408_v5  ;;  %v1409_v57 = vpack.c.bf16 %v1455_v13, %v1455_v13  ;;  %v1164_v2 = vpop.f32.mrb[3].mxu0  ;;  %v1216_v22 = vmul.f32 %v1455_v13, %v1455_v13  ;;  %v1224_v29 = vsel %vm318_vm5, %v1215_v47, 0.0  ;;  %v1197_v30 = vsel %vm318_vm5, %v1455_v13, 0.0 }
 0x22e   : > { %1279 = vst.msk [vmem:[%s2204_s24] sm:$0xf] %vm1278_vm7, %v1406_v58  ;;  %v1193_v16 = vsel %vm318_vm5, %v1164_v2, 0.0  ;;  %v1214_v17 = vmul.f32 %v1164_v2, %v1164_v2  ;;  %v1407_v18 = vpack.c.bf16 %v1164_v2, %v1164_v2  ;;  %v1221_v20 = vsel %vm318_vm5, %v1213_v10, 0.0 }
 0x22f   : > { %1282 = vst.msk [vmem:[%s2204_s24 + $0xc] sm:$0xf] %vm1278_vm7, %v1409_v57  ;;  %v1194_v19 = vadd.f32 %v1193_v16, %v1192_v21  ;;  %v1226_v33 = vsel %vm318_vm5, %v1216_v22, 0.0 }
 0x230   : > { %v1222_v24 = vsel %vm318_vm5, %v1214_v17, 0.0  ;;  %1280 = vst.msk [vmem:[%s2204_s24 + $0x4] sm:$0xf] %vm1278_vm7, %v1407_v18 }
 0x231   : > { %v1196_v6 = vadd.f32 %v1195_v63, %v1194_v19  ;;  %v1223_v27 = vadd.f32 %v1222_v24, %v1221_v20 }
 0x233   : > { %v1225_v11 = vadd.f32 %v1224_v29, %v1223_v27  ;;  %v1198_v31 = vadd.f32 %v1197_v30, %v1196_v6 }
 0x235   : > { %v1227_v32 = vadd.f32 %v1226_v33, %v1225_v11 }
 0x26a   : > { %v1458_v28 = vpop.f32.mrb[0].mxu1 }
 0x26b   : > { %v1412_v8 = vpack.c.bf16 %v1458_v28, %v1458_v28  ;;  %v1177_v34 = vpop.f32.mrb[1].mxu1  ;;  %v1219_v9 = vmul.f32 %v1458_v28, %v1458_v28  ;;  %v1203_v52 = vsel %vm318_vm5, %v1458_v28, 0.0 }
 0x26c   : > { %v1199_v35 = vsel %vm318_vm5, %v1177_v34, 0.0  ;;  %v1217_v36 = vmul.f32 %v1177_v34, %v1177_v34  ;;  %v1410_v51 = vpack.c.bf16 %v1177_v34, %v1177_v34  ;;  %v1459_v4 = vpop.f32.mrb[2].mxu1 }
 0x26d   : > { %1285 = vst.msk [vmem:[%s2204_s24 + $0x18] sm:$0xf] %vm1278_vm7, %v1412_v8  ;;  %v1200_v39 = vadd.f32 %v1199_v35, %v1198_v31  ;;  %v1180_v41 = vpop.f32.mrb[3].mxu1  ;;  %v1413_v40 = vpack.c.bf16 %v1459_v4, %v1459_v4  ;;  %v1220_v53 = vmul.f32 %v1459_v4, %v1459_v4  ;;  %v1232_v37 = vsel %vm318_vm5, %v1219_v9, 0.0 }
 0x26e   : > { %v1228_v25 = vsel %vm318_vm5, %v1217_v36, 0.0  ;;  %1283 = vst.msk [vmem:[%s2204_s24 + $0x10] sm:$0xf] %vm1278_vm7, %v1410_v51  ;;  %v1201_v43 = vsel %vm318_vm5, %v1180_v41, 0.0  ;;  %v1218_v45 = vmul.f32 %v1180_v41, %v1180_v41  ;;  %v1411_v49 = vpack.c.bf16 %v1180_v41, %v1180_v41 }
 0x26f   : > { %v1229_v46 = vadd.f32 %v1228_v25, %v1227_v32  ;;  %v1202_v48 = vadd.f32 %v1201_v43, %v1200_v39  ;;  %1286 = vst.msk [vmem:[%s2204_s24 + $0x1c] sm:$0xf] %vm1278_vm7, %v1413_v40  ;;  %v1205_v55 = vsel %vm318_vm5, %v1459_v4, 0.0  ;;  %v1234_v56 = vsel %vm318_vm5, %v1220_v53, 0.0 }
 0x270   : > { %v1230_v54 = vsel %vm318_vm5, %v1218_v45, 0.0  ;;  %1284 = vst.msk [vmem:[%s2204_s24 + $0x14] sm:$0xf] %vm1278_vm7, %v1411_v49  ;;  %vm1244_vm5 = vcmask 58368  }
 0x271   : > { %v1204_v1 = vadd.f32 %v1203_v52, %v1202_v48  ;;  %v1231_v12 = vadd.f32 %v1230_v54, %v1229_v46 }
 0x273   : > { %v1206_v14 = vadd.f32 %v1205_v55, %v1204_v1  ;;  %v1233_v38 = vadd.f32 %v1232_v37, %v1231_v12 }
 0x275   : > { %v1207_v59 = vrot.slane %v1206_v14, 4  ;;  %v1235_v60 = vadd.f32 %v1234_v56, %v1233_v38 }
 0x277   : > { %v1208_v61 = vadd.f32 %v1207_v59, %v1206_v14  ;;  %v1236_v7 = vrot.slane %v1235_v60, 4 }
 0x279   : > { %v1209_v44 = vrot.slane %v1208_v61, 2  ;;  %v1237_v42 = vadd.f32 %v1236_v7, %v1235_v60 }
 0x27b   : > { %v1210_v26 = vadd.f32 %v1209_v44, %v1208_v61  ;;  %v1238_v62 = vrot.slane %v1237_v42, 2 }
 0x27d   : > { %v1211_v15 = vrot.slane %v1210_v26, 1  ;;  %v1239_v50 = vadd.f32 %v1238_v62, %v1237_v42 }
 0x27f   : > { %v1240_v0 = vrot.slane %v1239_v50, 1  ;;  %v1212_v3 = vadd.f32 %v1211_v15, %v1210_v26 }
 0x281   : > { %v1241_v5 = vadd.f32 %v1240_v0, %v1239_v50 }
 0x283   : > { %v1243_v23 = vsel %vm1242_vm8, %v1212_v3, %v1241_v5 }
 0x284   : > { %1245 = vst.msk [vmem:[%s262_s27] sm:$0x3] %vm1244_vm5, %v1243_v23 }
 0x285 PF: > { %s17_s21 = sadd.s32 1, %s1693_s21  }
 0x286   : > { %p14_p4 = scmp.ge.s32.totalorder %s17_s21, 4  }
 0x288   :  { %16 = sbr.rel (!%p14_p4) target bundleno = 1 (0x1), region = 82 }

</bundles_post_ra>
